<compile_context>
chip_gen: v6e
topology: v6e:2x2x1
jax: 0.10.0
libtpu: 0.0.40
codegen_flags: <defaults>
</compile_context>

<pallas_src>
import jax
import jax.numpy as jnp
from jax.experimental import pallas as pl
from jax.experimental.pallas import tpu as pltpu

# ----------------------- small synthetic BERT config -----------------------
VOCAB = 32          # synthetic vocab (id 0 == PAD, as in the PyTorch mask)
B = 2               # batch
S = 8               # sequence length
H = 32              # hidden size
NUM_HEADS = 2
HEAD_DIM = H // NUM_HEADS
INTER = 64          # FFN intermediate size
NUM_LAYERS = 2      # -> 3 hidden states stacked (embeddings + 2 layers)
LN_EPS = 1e-12      # BERT LayerNorm eps
NEG_INF = -1e9      # additive attention-mask bias


# ------------------------------ shared helper -------------------------------
def _layernorm(x, gamma, beta):
    # One-pass moments: sum and sum-of-squares are independent reductions that
    # pipeline on the XLU (vs mean -> subtract -> square -> mean). f32 stats.
    inv_n = 1.0 / x.shape[-1]
    s1 = jnp.sum(x, axis=-1, keepdims=True)
    s2 = jnp.sum(x * x, axis=-1, keepdims=True)
    mean = s1 * inv_n
    var = jnp.maximum(s2 * inv_n - mean * mean, 0.0)
    return (x - mean) * jax.lax.rsqrt(var + LN_EPS) * gamma + beta


# --------------------------------- kernel -----------------------------------
def fused_encoder_kernel(emb_ref, bias_ref, eg_ref, eb_ref,
                         wqkv_ref, bqkv_ref, wo_ref, bo_ref, g1_ref, b1_ref,
                         w1_ref, bf1_ref, w2_ref, bf2_ref, g2_ref, b2_ref,
                         o_ref):
    # One grid program == one batch element.
    #   emb_ref : (1, S, H) f32      bias_ref: (1, 1, S) f32 additive mask
    #   wqkv    : (L, H, 3H) bf16 (Q columns pre-scaled by 1/sqrt(HEAD_DIM))
    #   bqkv    : (L, 1, 3H) f32     wo: (L, H, H) bf16
    #   w1      : (L, H, INTER) bf16 w2: (L, INTER, H) bf16
    #   bo/g1/b1/bf2/g2/b2: (L, 1, H) f32   bf1: (L, 1, INTER) f32
    #   o_ref   : (1, L+1, H) f32 -- CLS row of every hidden state
    bf16 = jnp.bfloat16

    # Hoisted once: (1,1,S) -> (1,S,S) mask bias (not re-broadcast per head/layer).
    bias = jnp.broadcast_to(bias_ref[...], (1, S, S))

    # Embedding LayerNorm (f32).
    x = _layernorm(emb_ref[...].reshape(S, H), eg_ref[...], eb_ref[...])   # (S, H)
    o_ref[:, 0:1, :] = x[0:1, :].reshape(1, 1, H)        # CLS of embedding output

    for l in range(NUM_LAYERS):   # tiny static loop; use lax.fori_loop/grid at real L
        # ---- fused QKV: one lane-dense (S,H)@(H,3H) MXU matmul ----
        qkv = (jnp.dot(x.astype(bf16), wqkv_ref[l],
                       preferred_element_type=jnp.float32)
               + bqkv_ref[l])                                            # (S, 3H) f32

        # ---- per-head attention (scores/contexts only; projections are fused) ----
        ctxs = []
        for h in range(NUM_HEADS):
            qh = qkv[:, h * HEAD_DIM:(h + 1) * HEAD_DIM]
            kh = qkv[:, H + h * HEAD_DIM:H + (h + 1) * HEAD_DIM]
            vh = qkv[:, 2 * H + h * HEAD_DIM:2 * H + (h + 1) * HEAD_DIM]
            s = jnp.einsum("bqd,bkd->bqk",
                           qh.astype(bf16).reshape(1, S, HEAD_DIM),
                           kh.astype(bf16).reshape(1, S, HEAD_DIM),
                           preferred_element_type=jnp.float32) + bias    # (1,S,S) f32
            s = s - jnp.max(s, axis=-1, keepdims=True)
            p = jnp.exp(s)
            p = p * pl.reciprocal(jnp.sum(p, axis=-1, keepdims=True), approx=True)
            ctx = jnp.einsum("bqk,bkd->bqd", p.astype(bf16),
                             vh.astype(bf16).reshape(1, S, HEAD_DIM),
                             preferred_element_type=jnp.float32)         # (1,S,HD)
            ctxs.append(ctx.reshape(S, HEAD_DIM))

        # ---- single lane-dense output projection over concatenated contexts ----
        ctx_all = jnp.concatenate(ctxs, axis=-1).astype(bf16)            # (S, H)
        attn_out = jnp.dot(ctx_all, wo_ref[l],
                           preferred_element_type=jnp.float32) + bo_ref[l]

        h1 = _layernorm(x + attn_out, g1_ref[l], b1_ref[l])

        # ---- feed-forward ----
        ff = jnp.dot(h1.astype(bf16), w1_ref[l],
                     preferred_element_type=jnp.float32) + bf1_ref[l]
        # TODO(synk): real HF BERT uses exact erf GELU; tanh approximation used here.
        ff = jax.nn.gelu(ff, approximate=True)
        ff = jnp.dot(ff.astype(bf16), w2_ref[l],
                     preferred_element_type=jnp.float32) + bf2_ref[l]

        x = _layernorm(h1 + ff, g2_ref[l], b2_ref[l])
        o_ref[:, l + 1:l + 2, :] = x[0:1, :].reshape(1, 1, H)   # CLS of this layer


# ------------------------------ host-side glue -------------------------------
def _stack_layer_params(layers):
    """Stack per-layer tuples, fuse Q|K|V, fold the softmax scale into Q, and
    cast all MXU weight operands to bf16 (biases / LN params stay f32)."""
    scale = 1.0 / (HEAD_DIM ** 0.5)

    def st(i):
        return jnp.stack([lp[i] for lp in layers])

    wq, bq = st(0) * scale, st(1) * scale          # softmax scale folded into Q
    wk, bk = st(2), st(3)
    wv, bv = st(4), st(5)
    wqkv = jnp.concatenate([wq, wk, wv], axis=-1)  # (L, H, 3H), columns = [Q|K|V]
    bqkv = jnp.concatenate([bq, bk, bv], axis=-1)  # (L, 1, 3H)
    wo, bo = st(6), st(7)                          # (L, H, H), (L, 1, H)
    g1, b1 = st(8), st(9)                          # (L, 1, H)
    w1, bf1 = st(10), st(11)                       # (L, H, INTER), (L, 1, INTER)
    w2, bf2 = st(12), st(13)                       # (L, INTER, H), (L, 1, H)
    g2, b2 = st(14), st(15)                        # (L, 1, H)

    def as_bf16(a):
        return a.astype(jnp.bfloat16)

    return (as_bf16(wqkv), bqkv, as_bf16(wo), bo, g1, b1,
            as_bf16(w1), bf1, as_bf16(w2), bf2, g2, b2)


def style_extractor_forward(input_ids, params):
    # attention_mask = (input != 0).float()
    attention_mask = (input_ids != 0).astype(jnp.float32)            # (B, S)
    mask_bias = ((1.0 - attention_mask) * NEG_INF)[:, None, :]       # (B, 1, S)

    # Embeddings (gather is glue, stays in plain JAX)
    emb = (jnp.take(params["word_emb"], input_ids, axis=0)
           + params["pos_emb"][None, :S, :]
           + params["type_emb"][0][None, None, :])                   # (B, S, H)

    stacked = _stack_layer_params(params["layers"])

    def full_spec(a):
        zeros = (0,) * a.ndim
        return pl.BlockSpec(a.shape, lambda b: zeros)   # constant index map: resident

    in_specs = ([pl.BlockSpec((1, S, H), lambda b: (b, 0, 0)),       # embeddings
                 pl.BlockSpec((1, 1, S), lambda b: (b, 0, 0)),       # mask bias
                 full_spec(params["emb_ln_g"]),
                 full_spec(params["emb_ln_b"])]
                + [full_spec(a) for a in stacked])

    out = pl.pallas_call(
        fused_encoder_kernel,
        out_shape=jax.ShapeDtypeStruct((B, NUM_LAYERS + 1, H), jnp.float32),
        grid=(B,),                                                   # batch is parallel
        in_specs=in_specs,
        out_specs=pl.BlockSpec((1, NUM_LAYERS + 1, H), lambda b: (b, 0, 0)),
        compiler_params=pltpu.CompilerParams(
            dimension_semantics=("parallel",)),
        # NOTE: at real BERT sizes add a layer grid axis ("arbitrary") with
        # layer-indexed weight BlockSpecs + vmem_limit_bytes so per-layer weights
        # stream from HBM instead of being fully VMEM-resident (v7x: 64 MiB VMEM).
    )(emb, mask_bias, params["emb_ln_g"], params["emb_ln_b"], *stacked)

    return out   # (B, L+1, H): CLS token of every hidden state


# --------------------------- pure-JAX reference ------------------------------
def reference_forward(input_ids, params):
    attention_mask = (input_ids != 0).astype(jnp.float32)
    bias = ((1.0 - attention_mask) * NEG_INF)[:, None, :]             # (B, 1, S)

    x = (jnp.take(params["word_emb"], input_ids, axis=0)
         + params["pos_emb"][None, :S, :]
         + params["type_emb"][0][None, None, :])
    x = _layernorm(x, params["emb_ln_g"][0], params["emb_ln_b"][0])

    all_hidden = [x]
    for (wq, bq, wk, bk, wv, bv, wo, bo, g1, b1, w1, bf1, w2, bf2, g2, b2) in params["layers"]:
        q = x @ wq + bq
        k = x @ wk + bk
        v = x @ wv + bv
        scale = 1.0 / (HEAD_DIM ** 0.5)
        ctxs = []
        for h in range(NUM_HEADS):
            sl = slice(h * HEAD_DIM, (h + 1) * HEAD_DIM)
            s = jnp.einsum("bqd,bkd->bqk", q[..., sl], k[..., sl]) * scale + bias
            p = jax.nn.softmax(s, axis=-1)
            ctxs.append(jnp.einsum("bqk,bkd->bqd", p, v[..., sl]))
        ctx = jnp.concatenate(ctxs, axis=-1)
        h1 = _layernorm(x + (ctx @ wo + bo), g1[0], b1[0])
        ff = jax.nn.gelu(h1 @ w1 + bf1, approximate=True) @ w2 + bf2
        x = _layernorm(h1 + ff, g2[0], b2[0])
        all_hidden.append(x)
    return jnp.stack(all_hidden, axis=1)[:, :, 0, :]


# ------------------------------ parameter init -------------------------------
def init_params(key):
    def nrm(k, shape):
        return 0.02 * jax.random.normal(k, shape, dtype=jnp.float32)

    keys = iter(jax.random.split(key, 4 + 6 * NUM_LAYERS))
    params = {
        "word_emb": nrm(next(keys), (VOCAB, H)),
        "pos_emb": nrm(next(keys), (S, H)),
        "type_emb": nrm(next(keys), (2, H)),
        "emb_ln_g": jnp.ones((1, H), jnp.float32),
        "emb_ln_b": jnp.zeros((1, H), jnp.float32),
        "layers": [],
    }
    for _ in range(NUM_LAYERS):
        wq = nrm(next(keys), (H, H)); wk = nrm(next(keys), (H, H))
        wv = nrm(next(keys), (H, H)); wo = nrm(next(keys), (H, H))
        w1 = nrm(next(keys), (H, INTER)); w2 = nrm(next(keys), (INTER, H))
        layer = (
            wq, jnp.zeros((1, H), jnp.float32),
            wk, jnp.zeros((1, H), jnp.float32),
            wv, jnp.zeros((1, H), jnp.float32),
            wo, jnp.zeros((1, H), jnp.float32),
            jnp.ones((1, H), jnp.float32), jnp.zeros((1, H), jnp.float32),
            w1, jnp.zeros((1, INTER), jnp.float32),
            w2, jnp.zeros((1, H), jnp.float32),
            jnp.ones((1, H), jnp.float32), jnp.zeros((1, H), jnp.float32),
        )
        params["layers"].append(layer)
    return params


# ----------------------------------- main ------------------------------------
if __name__ == "__main__":
    key = jax.random.PRNGKey(0)
    k_ids, k_params = jax.random.split(key)

    # synthetic token ids; id 0 == PAD so the mask path is exercised
    input_ids = jax.random.randint(k_ids, (B, S), 1, VOCAB, dtype=jnp.int32)
    input_ids = input_ids.at[:, -2:].set(0)

    params = init_params(k_params)

    fwd = jax.jit(style_extractor_forward)
    out = jax.block_until_ready(fwd(input_ids, params))
    assert out.shape == (B, NUM_LAYERS + 1, H), out.shape

    ref = jax.block_until_ready(reference_forward(input_ids, params))
    assert bool(jnp.all(jnp.isfinite(out)))
    assert bool(jnp.allclose(out, ref, atol=1e-2, rtol=1e-2))

    print("KERNEL_OK")
</pallas_src>

<mosaic_0001>
module attributes {stable_mosaic.version = 11 : i64} {
  func.func @fused_encoder_kernel(%arg0: i32, %arg1: memref<1x8x32xf32, #tpu.memory_space<vmem>>, %arg2: memref<1x1x8xf32, #tpu.memory_space<vmem>>, %arg3: memref<1x32xf32, #tpu.memory_space<vmem>>, %arg4: memref<1x32xf32, #tpu.memory_space<vmem>>, %arg5: memref<2x32x96xbf16, #tpu.memory_space<vmem>>, %arg6: memref<2x1x96xf32, #tpu.memory_space<vmem>>, %arg7: memref<2x32x32xbf16, #tpu.memory_space<vmem>>, %arg8: memref<2x1x32xf32, #tpu.memory_space<vmem>>, %arg9: memref<2x1x32xf32, #tpu.memory_space<vmem>>, %arg10: memref<2x1x32xf32, #tpu.memory_space<vmem>>, %arg11: memref<2x32x64xbf16, #tpu.memory_space<vmem>>, %arg12: memref<2x1x64xf32, #tpu.memory_space<vmem>>, %arg13: memref<2x64x32xbf16, #tpu.memory_space<vmem>>, %arg14: memref<2x1x32xf32, #tpu.memory_space<vmem>>, %arg15: memref<2x1x32xf32, #tpu.memory_space<vmem>>, %arg16: memref<2x1x32xf32, #tpu.memory_space<vmem>>, %arg17: memref<1x3x32xf32, #tpu.memory_space<vmem>>) attributes {dimension_semantics = [#tpu.dimension_semantics<parallel>], iteration_bounds = array<i64: 2>, scalar_prefetch = 0 : i64, scratch_operands = 0 : i64, tpu.core_type = #tpu.core_type<tc>, window_params = [{transform_indices = @transform_0, window_bounds = array<i64: 1, 8, 32>}, {transform_indices = @transform_1, window_bounds = array<i64: 1, 1, 8>}, {pipeline_mode = #tpu.pipeline_mode<synchronous>, transform_indices = @transform_2, window_bounds = array<i64: 1, 32>}, {pipeline_mode = #tpu.pipeline_mode<synchronous>, transform_indices = @transform_3, window_bounds = array<i64: 1, 32>}, {pipeline_mode = #tpu.pipeline_mode<synchronous>, transform_indices = @transform_4, window_bounds = array<i64: 2, 32, 96>}, {pipeline_mode = #tpu.pipeline_mode<synchronous>, transform_indices = @transform_5, window_bounds = array<i64: 2, 1, 96>}, {pipeline_mode = #tpu.pipeline_mode<synchronous>, transform_indices = @transform_6, window_bounds = array<i64: 2, 32, 32>}, {pipeline_mode = #tpu.pipeline_mode<synchronous>, transform_indices = @transform_7, window_bounds = array<i64: 2, 1, 32>}, {pipeline_mode = #tpu.pipeline_mode<synchronous>, transform_indices = @transform_8, window_bounds = array<i64: 2, 1, 32>}, {pipeline_mode = #tpu.pipeline_mode<synchronous>, transform_indices = @transform_9, window_bounds = array<i64: 2, 1, 32>}, {pipeline_mode = #tpu.pipeline_mode<synchronous>, transform_indices = @transform_10, window_bounds = array<i64: 2, 32, 64>}, {pipeline_mode = #tpu.pipeline_mode<synchronous>, transform_indices = @transform_11, window_bounds = array<i64: 2, 1, 64>}, {pipeline_mode = #tpu.pipeline_mode<synchronous>, transform_indices = @transform_12, window_bounds = array<i64: 2, 64, 32>}, {pipeline_mode = #tpu.pipeline_mode<synchronous>, transform_indices = @transform_13, window_bounds = array<i64: 2, 1, 32>}, {pipeline_mode = #tpu.pipeline_mode<synchronous>, transform_indices = @transform_14, window_bounds = array<i64: 2, 1, 32>}, {pipeline_mode = #tpu.pipeline_mode<synchronous>, transform_indices = @transform_15, window_bounds = array<i64: 2, 1, 32>}, {transform_indices = @transform_16, window_bounds = array<i64: 1, 3, 32>}]} {
    %c0 = arith.constant 0 : index
    %c0_0 = arith.constant 0 : index
    %c0_1 = arith.constant 0 : index
    %0 = vector.load %arg2[%c0, %c0_0, %c0_1] : memref<1x1x8xf32, #tpu.memory_space<vmem>>, vector<1x1x8xf32>
    %1 = vector.shape_cast %0 : vector<1x1x8xf32> to vector<1x1x8xf32>
    %2 = vector.broadcast %1 : vector<1x1x8xf32> to vector<1x8x8xf32>
    %c0_2 = arith.constant 0 : index
    %c0_3 = arith.constant 0 : index
    %c0_4 = arith.constant 0 : index
    %3 = vector.load %arg1[%c0_2, %c0_3, %c0_4] : memref<1x8x32xf32, #tpu.memory_space<vmem>>, vector<1x8x32xf32>
    %4 = vector.shape_cast %3 : vector<1x8x32xf32> to vector<8x32xf32>
    %c0_5 = arith.constant 0 : index
    %c0_6 = arith.constant 0 : index
    %5 = vector.load %arg3[%c0_5, %c0_6] : memref<1x32xf32, #tpu.memory_space<vmem>>, vector<1x32xf32>
    %c0_7 = arith.constant 0 : index
    %c0_8 = arith.constant 0 : index
    %6 = vector.load %arg4[%c0_7, %c0_8] : memref<1x32xf32, #tpu.memory_space<vmem>>, vector<1x32xf32>
    %cst = arith.constant dense<0.000000e+00> : vector<8xf32>
    %7 = vector.multi_reduction <add>, %4, %cst [1] : vector<8x32xf32> to vector<8xf32>
    %8 = vector.shape_cast %7 : vector<8xf32> to vector<8x1xf32>
    %9 = arith.mulf %4, %4 : vector<8x32xf32>
    %cst_9 = arith.constant dense<0.000000e+00> : vector<8xf32>
    %10 = vector.multi_reduction <add>, %9, %cst_9 [1] : vector<8x32xf32> to vector<8xf32>
    %11 = vector.shape_cast %10 : vector<8xf32> to vector<8x1xf32>
    %cst_10 = arith.constant 3.125000e-02 : f32
    %12 = vector.broadcast %cst_10 : f32 to vector<8x1xf32>
    %13 = arith.mulf %8, %12 : vector<8x1xf32>
    %cst_11 = arith.constant 3.125000e-02 : f32
    %14 = vector.broadcast %cst_11 : f32 to vector<8x1xf32>
    %15 = arith.mulf %11, %14 : vector<8x1xf32>
    %16 = arith.mulf %13, %13 : vector<8x1xf32>
    %17 = arith.subf %15, %16 : vector<8x1xf32>
    %cst_12 = arith.constant 0.000000e+00 : f32
    %18 = vector.broadcast %cst_12 : f32 to vector<8x1xf32>
    %19 = arith.maximumf %17, %18 : vector<8x1xf32>
    %20 = vector.broadcast %13 : vector<8x1xf32> to vector<8x32xf32>
    %21 = arith.subf %4, %20 : vector<8x32xf32>
    %cst_13 = arith.constant 9.99999996E-13 : f32
    %22 = vector.broadcast %cst_13 : f32 to vector<8x1xf32>
    %23 = arith.addf %19, %22 : vector<8x1xf32>
    %24 = math.rsqrt %23 : vector<8x1xf32>
    %25 = vector.broadcast %24 : vector<8x1xf32> to vector<8x32xf32>
    %26 = arith.mulf %21, %25 : vector<8x32xf32>
    %27 = vector.broadcast %5 : vector<1x32xf32> to vector<8x32xf32>
    %28 = arith.mulf %26, %27 : vector<8x32xf32>
    %29 = vector.broadcast %6 : vector<1x32xf32> to vector<8x32xf32>
    %30 = arith.addf %28, %29 : vector<8x32xf32>
    %31 = vector.extract_strided_slice %30 {offsets = [0, 0], sizes = [1, 32], strides = [1, 1]} : vector<8x32xf32> to vector<1x32xf32>
    %32 = vector.shape_cast %31 : vector<1x32xf32> to vector<1x1x32xf32>
    %c0_14 = arith.constant 0 : index
    %c0_15 = arith.constant 0 : index
    %c0_16 = arith.constant 0 : index
    %33 = vector.load %arg17[%c0_14, %c0_15, %c0_16] : memref<1x3x32xf32, #tpu.memory_space<vmem>>, vector<1x1x32xf32>
    tpu.vector_store %arg17[%c0_14, %c0_15, %c0_16], %32 {strides = array<i32>} : memref<1x3x32xf32, #tpu.memory_space<vmem>>, vector<1x1x32xf32>,
    %34 = arith.truncf %30 : vector<8x32xf32> to vector<8x32xbf16>
    %c0_17 = arith.constant 0 : index
    %c0_18 = arith.constant 0 : index
    %c0_19 = arith.constant 0 : index
    %35 = vector.load %arg5[%c0_17, %c0_18, %c0_19] : memref<2x32x96xbf16, #tpu.memory_space<vmem>>, vector<1x32x96xbf16>
    %36 = vector.shape_cast %35 : vector<1x32x96xbf16> to vector<32x96xbf16>
    %cst_20 = arith.constant dense<0.000000e+00> : vector<8x96xf32>
    %37 = tpu.matmul %34, %36, %cst_20 {dimension_numbers = #tpu.dot_dimension_numbers<[1], [0], [0], [1], [0, 0, 1, 1], [], []>} : vector<8x32xbf16>, vector<32x96xbf16>, vector<8x96xf32> -> vector<8x96xf32>
    %c0_21 = arith.constant 0 : index
    %c0_22 = arith.constant 0 : index
    %c0_23 = arith.constant 0 : index
    %38 = vector.load %arg6[%c0_21, %c0_22, %c0_23] : memref<2x1x96xf32, #tpu.memory_space<vmem>>, vector<1x1x96xf32>
    %39 = vector.shape_cast %38 : vector<1x1x96xf32> to vector<1x96xf32>
    %40 = vector.broadcast %39 : vector<1x96xf32> to vector<8x96xf32>
    %41 = arith.addf %37, %40 : vector<8x96xf32>
    %42 = vector.extract_strided_slice %41 {offsets = [0, 0], sizes = [8, 16], strides = [1, 1]} : vector<8x96xf32> to vector<8x16xf32>
    %43 = vector.extract_strided_slice %41 {offsets = [0, 32], sizes = [8, 16], strides = [1, 1]} : vector<8x96xf32> to vector<8x16xf32>
    %44 = vector.extract_strided_slice %41 {offsets = [0, 64], sizes = [8, 16], strides = [1, 1]} : vector<8x96xf32> to vector<8x16xf32>
    %45 = arith.truncf %42 : vector<8x16xf32> to vector<8x16xbf16>
    %46 = vector.shape_cast %45 : vector<8x16xbf16> to vector<1x8x16xbf16>
    %47 = arith.truncf %43 : vector<8x16xf32> to vector<8x16xbf16>
    %48 = vector.shape_cast %47 : vector<8x16xbf16> to vector<1x8x16xbf16>
    "tpu.trace_start"() <{level = 10 : i32, message = "bqd,bkd->bqk"}> : () -> ()
    %cst_24 = arith.constant dense<0.000000e+00> : vector<1x8x8xf32>
    %49 = tpu.matmul %46, %48, %cst_24 {dimension_numbers = #tpu.dot_dimension_numbers<[2], [2], [1], [1], [0, 0, 0, 1, 1, 1], [0], [0]>} : vector<1x8x16xbf16>, vector<1x8x16xbf16>, vector<1x8x8xf32> -> vector<1x8x8xf32>
    "tpu.trace_stop"() : () -> ()
    %50 = arith.addf %49, %2 : vector<1x8x8xf32>
    %cst_25 = arith.constant dense<0xFF800000> : vector<1x8xf32>
    %51 = vector.multi_reduction <maximumf>, %50, %cst_25 [2] : vector<1x8x8xf32> to vector<1x8xf32>
    %52 = vector.shape_cast %51 : vector<1x8xf32> to vector<1x8x1xf32>
    %53 = vector.broadcast %52 : vector<1x8x1xf32> to vector<1x8x8xf32>
    %54 = arith.subf %50, %53 : vector<1x8x8xf32>
    %55 = math.exp %54 : vector<1x8x8xf32>
    %cst_26 = arith.constant dense<0.000000e+00> : vector<1x8xf32>
    %56 = vector.multi_reduction <add>, %55, %cst_26 [2] : vector<1x8x8xf32> to vector<1x8xf32>
    %57 = vector.shape_cast %56 : vector<1x8xf32> to vector<1x8x1xf32>
    %58 = tpu.reciprocal %57 {approx = true} : vector<1x8x1xf32> -> vector<1x8x1xf32>
    %59 = vector.broadcast %58 : vector<1x8x1xf32> to vector<1x8x8xf32>
    %60 = arith.mulf %55, %59 : vector<1x8x8xf32>
    %61 = arith.truncf %60 : vector<1x8x8xf32> to vector<1x8x8xbf16>
    %62 = arith.truncf %44 : vector<8x16xf32> to vector<8x16xbf16>
    %63 = vector.shape_cast %62 : vector<8x16xbf16> to vector<1x8x16xbf16>
    "tpu.trace_start"() <{level = 10 : i32, message = "bqk,bkd->bqd"}> : () -> ()
    %cst_27 = arith.constant dense<0.000000e+00> : vector<1x8x16xf32>
    %64 = tpu.matmul %61, %63, %cst_27 {dimension_numbers = #tpu.dot_dimension_numbers<[2], [1], [1], [2], [0, 0, 0, 1, 1, 2], [0], [0]>} : vector<1x8x8xbf16>, vector<1x8x16xbf16>, vector<1x8x16xf32> -> vector<1x8x16xf32>
    "tpu.trace_stop"() : () -> ()
    %65 = vector.shape_cast %64 : vector<1x8x16xf32> to vector<8x16xf32>
    %66 = vector.extract_strided_slice %41 {offsets = [0, 16], sizes = [8, 16], strides = [1, 1]} : vector<8x96xf32> to vector<8x16xf32>
    %67 = vector.extract_strided_slice %41 {offsets = [0, 48], sizes = [8, 16], strides = [1, 1]} : vector<8x96xf32> to vector<8x16xf32>
    %68 = vector.extract_strided_slice %41 {offsets = [0, 80], sizes = [8, 16], strides = [1, 1]} : vector<8x96xf32> to vector<8x16xf32>
    %69 = arith.truncf %66 : vector<8x16xf32> to vector<8x16xbf16>
    %70 = vector.shape_cast %69 : vector<8x16xbf16> to vector<1x8x16xbf16>
    %71 = arith.truncf %67 : vector<8x16xf32> to vector<8x16xbf16>
    %72 = vector.shape_cast %71 : vector<8x16xbf16> to vector<1x8x16xbf16>
    "tpu.trace_start"() <{level = 10 : i32, message = "bqd,bkd->bqk"}> : () -> ()
    %cst_28 = arith.constant dense<0.000000e+00> : vector<1x8x8xf32>
    %73 = tpu.matmul %70, %72, %cst_28 {dimension_numbers = #tpu.dot_dimension_numbers<[2], [2], [1], [1], [0, 0, 0, 1, 1, 1], [0], [0]>} : vector<1x8x16xbf16>, vector<1x8x16xbf16>, vector<1x8x8xf32> -> vector<1x8x8xf32>
    "tpu.trace_stop"() : () -> ()
    %74 = arith.addf %73, %2 : vector<1x8x8xf32>
    %cst_29 = arith.constant dense<0xFF800000> : vector<1x8xf32>
    %75 = vector.multi_reduction <maximumf>, %74, %cst_29 [2] : vector<1x8x8xf32> to vector<1x8xf32>
    %76 = vector.shape_cast %75 : vector<1x8xf32> to vector<1x8x1xf32>
    %77 = vector.broadcast %76 : vector<1x8x1xf32> to vector<1x8x8xf32>
    %78 = arith.subf %74, %77 : vector<1x8x8xf32>
    %79 = math.exp %78 : vector<1x8x8xf32>
    %cst_30 = arith.constant dense<0.000000e+00> : vector<1x8xf32>
    %80 = vector.multi_reduction <add>, %79, %cst_30 [2] : vector<1x8x8xf32> to vector<1x8xf32>
    %81 = vector.shape_cast %80 : vector<1x8xf32> to vector<1x8x1xf32>
    %82 = tpu.reciprocal %81 {approx = true} : vector<1x8x1xf32> -> vector<1x8x1xf32>
    %83 = vector.broadcast %82 : vector<1x8x1xf32> to vector<1x8x8xf32>
    %84 = arith.mulf %79, %83 : vector<1x8x8xf32>
    %85 = arith.truncf %84 : vector<1x8x8xf32> to vector<1x8x8xbf16>
    %86 = arith.truncf %68 : vector<8x16xf32> to vector<8x16xbf16>
    %87 = vector.shape_cast %86 : vector<8x16xbf16> to vector<1x8x16xbf16>
    "tpu.trace_start"() <{level = 10 : i32, message = "bqk,bkd->bqd"}> : () -> ()
    %cst_31 = arith.constant dense<0.000000e+00> : vector<1x8x16xf32>
    %88 = tpu.matmul %85, %87, %cst_31 {dimension_numbers = #tpu.dot_dimension_numbers<[2], [1], [1], [2], [0, 0, 0, 1, 1, 2], [0], [0]>} : vector<1x8x8xbf16>, vector<1x8x16xbf16>, vector<1x8x16xf32> -> vector<1x8x16xf32>
    "tpu.trace_stop"() : () -> ()
    %89 = vector.shape_cast %88 : vector<1x8x16xf32> to vector<8x16xf32>
    %90 = tpu.concatenate %65, %89 in 1 : vector<8x16xf32>, vector<8x16xf32> -> vector<8x32xf32>
    %91 = arith.truncf %90 : vector<8x32xf32> to vector<8x32xbf16>
    %c0_32 = arith.constant 0 : index
    %c0_33 = arith.constant 0 : index
    %c0_34 = arith.constant 0 : index
    %92 = vector.load %arg7[%c0_32, %c0_33, %c0_34] : memref<2x32x32xbf16, #tpu.memory_space<vmem>>, vector<1x32x32xbf16>
    %93 = vector.shape_cast %92 : vector<1x32x32xbf16> to vector<32x32xbf16>
    %cst_35 = arith.constant dense<0.000000e+00> : vector<8x32xf32>
    %94 = tpu.matmul %91, %93, %cst_35 {dimension_numbers = #tpu.dot_dimension_numbers<[1], [0], [0], [1], [0, 0, 1, 1], [], []>} : vector<8x32xbf16>, vector<32x32xbf16>, vector<8x32xf32> -> vector<8x32xf32>
    %c0_36 = arith.constant 0 : index
    %c0_37 = arith.constant 0 : index
    %c0_38 = arith.constant 0 : index
    %95 = vector.load %arg8[%c0_36, %c0_37, %c0_38] : memref<2x1x32xf32, #tpu.memory_space<vmem>>, vector<1x1x32xf32>
    %96 = vector.shape_cast %95 : vector<1x1x32xf32> to vector<1x32xf32>
    %97 = vector.broadcast %96 : vector<1x32xf32> to vector<8x32xf32>
    %98 = arith.addf %94, %97 : vector<8x32xf32>
    %99 = arith.addf %30, %98 : vector<8x32xf32>
    %c0_39 = arith.constant 0 : index
    %c0_40 = arith.constant 0 : index
    %c0_41 = arith.constant 0 : index
    %100 = vector.load %arg9[%c0_39, %c0_40, %c0_41] : memref<2x1x32xf32, #tpu.memory_space<vmem>>, vector<1x1x32xf32>
    %101 = vector.shape_cast %100 : vector<1x1x32xf32> to vector<1x32xf32>
    %c0_42 = arith.constant 0 : index
    %c0_43 = arith.constant 0 : index
    %c0_44 = arith.constant 0 : index
    %102 = vector.load %arg10[%c0_42, %c0_43, %c0_44] : memref<2x1x32xf32, #tpu.memory_space<vmem>>, vector<1x1x32xf32>
    %103 = vector.shape_cast %102 : vector<1x1x32xf32> to vector<1x32xf32>
    %cst_45 = arith.constant dense<0.000000e+00> : vector<8xf32>
    %104 = vector.multi_reduction <add>, %99, %cst_45 [1] : vector<8x32xf32> to vector<8xf32>
    %105 = vector.shape_cast %104 : vector<8xf32> to vector<8x1xf32>
    %106 = arith.mulf %99, %99 : vector<8x32xf32>
    %cst_46 = arith.constant dense<0.000000e+00> : vector<8xf32>
    %107 = vector.multi_reduction <add>, %106, %cst_46 [1] : vector<8x32xf32> to vector<8xf32>
    %108 = vector.shape_cast %107 : vector<8xf32> to vector<8x1xf32>
    %cst_47 = arith.constant 3.125000e-02 : f32
    %109 = vector.broadcast %cst_47 : f32 to vector<8x1xf32>
    %110 = arith.mulf %105, %109 : vector<8x1xf32>
    %cst_48 = arith.constant 3.125000e-02 : f32
    %111 = vector.broadcast %cst_48 : f32 to vector<8x1xf32>
    %112 = arith.mulf %108, %111 : vector<8x1xf32>
    %113 = arith.mulf %110, %110 : vector<8x1xf32>
    %114 = arith.subf %112, %113 : vector<8x1xf32>
    %cst_49 = arith.constant 0.000000e+00 : f32
    %115 = vector.broadcast %cst_49 : f32 to vector<8x1xf32>
    %116 = arith.maximumf %114, %115 : vector<8x1xf32>
    %117 = vector.broadcast %110 : vector<8x1xf32> to vector<8x32xf32>
    %118 = arith.subf %99, %117 : vector<8x32xf32>
    %cst_50 = arith.constant 9.99999996E-13 : f32
    %119 = vector.broadcast %cst_50 : f32 to vector<8x1xf32>
    %120 = arith.addf %116, %119 : vector<8x1xf32>
    %121 = math.rsqrt %120 : vector<8x1xf32>
    %122 = vector.broadcast %121 : vector<8x1xf32> to vector<8x32xf32>
    %123 = arith.mulf %118, %122 : vector<8x32xf32>
    %124 = vector.broadcast %101 : vector<1x32xf32> to vector<8x32xf32>
    %125 = arith.mulf %123, %124 : vector<8x32xf32>
    %126 = vector.broadcast %103 : vector<1x32xf32> to vector<8x32xf32>
    %127 = arith.addf %125, %126 : vector<8x32xf32>
    %128 = arith.truncf %127 : vector<8x32xf32> to vector<8x32xbf16>
    %c0_51 = arith.constant 0 : index
    %c0_52 = arith.constant 0 : index
    %c0_53 = arith.constant 0 : index
    %129 = vector.load %arg11[%c0_51, %c0_52, %c0_53] : memref<2x32x64xbf16, #tpu.memory_space<vmem>>, vector<1x32x64xbf16>
    %130 = vector.shape_cast %129 : vector<1x32x64xbf16> to vector<32x64xbf16>
    %cst_54 = arith.constant dense<0.000000e+00> : vector<8x64xf32>
    %131 = tpu.matmul %128, %130, %cst_54 {dimension_numbers = #tpu.dot_dimension_numbers<[1], [0], [0], [1], [0, 0, 1, 1], [], []>} : vector<8x32xbf16>, vector<32x64xbf16>, vector<8x64xf32> -> vector<8x64xf32>
    %c0_55 = arith.constant 0 : index
    %c0_56 = arith.constant 0 : index
    %c0_57 = arith.constant 0 : index
    %132 = vector.load %arg12[%c0_55, %c0_56, %c0_57] : memref<2x1x64xf32, #tpu.memory_space<vmem>>, vector<1x1x64xf32>
    %133 = vector.shape_cast %132 : vector<1x1x64xf32> to vector<1x64xf32>
    %134 = vector.broadcast %133 : vector<1x64xf32> to vector<8x64xf32>
    %135 = arith.addf %131, %134 : vector<8x64xf32>
    %136 = arith.mulf %135, %135 : vector<8x64xf32>
    %137 = arith.mulf %135, %136 : vector<8x64xf32>
    %cst_58 = arith.constant 4.471500e-02 : f32
    %138 = vector.broadcast %cst_58 : f32 to vector<8x64xf32>
    %139 = arith.mulf %138, %137 : vector<8x64xf32>
    %140 = arith.addf %135, %139 : vector<8x64xf32>
    %cst_59 = arith.constant 0.797884583 : f32
    %141 = vector.broadcast %cst_59 : f32 to vector<8x64xf32>
    %142 = arith.mulf %141, %140 : vector<8x64xf32>
    %143 = math.tanh %142 : vector<8x64xf32>
    %cst_60 = arith.constant 1.000000e+00 : f32
    %144 = vector.broadcast %cst_60 : f32 to vector<8x64xf32>
    %145 = arith.addf %144, %143 : vector<8x64xf32>
    %cst_61 = arith.constant 5.000000e-01 : f32
    %146 = vector.broadcast %cst_61 : f32 to vector<8x64xf32>
    %147 = arith.mulf %146, %145 : vector<8x64xf32>
    %148 = arith.mulf %135, %147 : vector<8x64xf32>
    %149 = arith.truncf %148 : vector<8x64xf32> to vector<8x64xbf16>
    %c0_62 = arith.constant 0 : index
    %c0_63 = arith.constant 0 : index
    %c0_64 = arith.constant 0 : index
    %150 = vector.load %arg13[%c0_62, %c0_63, %c0_64] : memref<2x64x32xbf16, #tpu.memory_space<vmem>>, vector<1x64x32xbf16>
    %151 = vector.shape_cast %150 : vector<1x64x32xbf16> to vector<64x32xbf16>
    %cst_65 = arith.constant dense<0.000000e+00> : vector<8x32xf32>
    %152 = tpu.matmul %149, %151, %cst_65 {dimension_numbers = #tpu.dot_dimension_numbers<[1], [0], [0], [1], [0, 0, 1, 1], [], []>} : vector<8x64xbf16>, vector<64x32xbf16>, vector<8x32xf32> -> vector<8x32xf32>
    %c0_66 = arith.constant 0 : index
    %c0_67 = arith.constant 0 : index
    %c0_68 = arith.constant 0 : index
    %153 = vector.load %arg14[%c0_66, %c0_67, %c0_68] : memref<2x1x32xf32, #tpu.memory_space<vmem>>, vector<1x1x32xf32>
    %154 = vector.shape_cast %153 : vector<1x1x32xf32> to vector<1x32xf32>
    %155 = vector.broadcast %154 : vector<1x32xf32> to vector<8x32xf32>
    %156 = arith.addf %152, %155 : vector<8x32xf32>
    %157 = arith.addf %127, %156 : vector<8x32xf32>
    %c0_69 = arith.constant 0 : index
    %c0_70 = arith.constant 0 : index
    %c0_71 = arith.constant 0 : index
    %158 = vector.load %arg15[%c0_69, %c0_70, %c0_71] : memref<2x1x32xf32, #tpu.memory_space<vmem>>, vector<1x1x32xf32>
    %159 = vector.shape_cast %158 : vector<1x1x32xf32> to vector<1x32xf32>
    %c0_72 = arith.constant 0 : index
    %c0_73 = arith.constant 0 : index
    %c0_74 = arith.constant 0 : index
    %160 = vector.load %arg16[%c0_72, %c0_73, %c0_74] : memref<2x1x32xf32, #tpu.memory_space<vmem>>, vector<1x1x32xf32>
    %161 = vector.shape_cast %160 : vector<1x1x32xf32> to vector<1x32xf32>
    %cst_75 = arith.constant dense<0.000000e+00> : vector<8xf32>
    %162 = vector.multi_reduction <add>, %157, %cst_75 [1] : vector<8x32xf32> to vector<8xf32>
    %163 = vector.shape_cast %162 : vector<8xf32> to vector<8x1xf32>
    %164 = arith.mulf %157, %157 : vector<8x32xf32>
    %cst_76 = arith.constant dense<0.000000e+00> : vector<8xf32>
    %165 = vector.multi_reduction <add>, %164, %cst_76 [1] : vector<8x32xf32> to vector<8xf32>
    %166 = vector.shape_cast %165 : vector<8xf32> to vector<8x1xf32>
    %cst_77 = arith.constant 3.125000e-02 : f32
    %167 = vector.broadcast %cst_77 : f32 to vector<8x1xf32>
    %168 = arith.mulf %163, %167 : vector<8x1xf32>
    %cst_78 = arith.constant 3.125000e-02 : f32
    %169 = vector.broadcast %cst_78 : f32 to vector<8x1xf32>
    %170 = arith.mulf %166, %169 : vector<8x1xf32>
    %171 = arith.mulf %168, %168 : vector<8x1xf32>
    %172 = arith.subf %170, %171 : vector<8x1xf32>
    %cst_79 = arith.constant 0.000000e+00 : f32
    %173 = vector.broadcast %cst_79 : f32 to vector<8x1xf32>
    %174 = arith.maximumf %172, %173 : vector<8x1xf32>
    %175 = vector.broadcast %168 : vector<8x1xf32> to vector<8x32xf32>
    %176 = arith.subf %157, %175 : vector<8x32xf32>
    %cst_80 = arith.constant 9.99999996E-13 : f32
    %177 = vector.broadcast %cst_80 : f32 to vector<8x1xf32>
    %178 = arith.addf %174, %177 : vector<8x1xf32>
    %179 = math.rsqrt %178 : vector<8x1xf32>
    %180 = vector.broadcast %179 : vector<8x1xf32> to vector<8x32xf32>
    %181 = arith.mulf %176, %180 : vector<8x32xf32>
    %182 = vector.broadcast %159 : vector<1x32xf32> to vector<8x32xf32>
    %183 = arith.mulf %181, %182 : vector<8x32xf32>
    %184 = vector.broadcast %161 : vector<1x32xf32> to vector<8x32xf32>
    %185 = arith.addf %183, %184 : vector<8x32xf32>
    %186 = vector.extract_strided_slice %185 {offsets = [0, 0], sizes = [1, 32], strides = [1, 1]} : vector<8x32xf32> to vector<1x32xf32>
    %187 = vector.shape_cast %186 : vector<1x32xf32> to vector<1x1x32xf32>
    %c0_81 = arith.constant 0 : index
    %c1 = arith.constant 1 : index
    %c0_82 = arith.constant 0 : index
    %188 = vector.load %arg17[%c0_81, %c1, %c0_82] : memref<1x3x32xf32, #tpu.memory_space<vmem>>, vector<1x1x32xf32>
    tpu.vector_store %arg17[%c0_81, %c1, %c0_82], %187 {strides = array<i32>} : memref<1x3x32xf32, #tpu.memory_space<vmem>>, vector<1x1x32xf32>,
    %189 = arith.truncf %185 : vector<8x32xf32> to vector<8x32xbf16>
    %c1_83 = arith.constant 1 : index
    %c0_84 = arith.constant 0 : index
    %c0_85 = arith.constant 0 : index
    %190 = vector.load %arg5[%c1_83, %c0_84, %c0_85] : memref<2x32x96xbf16, #tpu.memory_space<vmem>>, vector<1x32x96xbf16>
    %191 = vector.shape_cast %190 : vector<1x32x96xbf16> to vector<32x96xbf16>
    %cst_86 = arith.constant dense<0.000000e+00> : vector<8x96xf32>
    %192 = tpu.matmul %189, %191, %cst_86 {dimension_numbers = #tpu.dot_dimension_numbers<[1], [0], [0], [1], [0, 0, 1, 1], [], []>} : vector<8x32xbf16>, vector<32x96xbf16>, vector<8x96xf32> -> vector<8x96xf32>
    %c1_87 = arith.constant 1 : index
    %c0_88 = arith.constant 0 : index
    %c0_89 = arith.constant 0 : index
    %193 = vector.load %arg6[%c1_87, %c0_88, %c0_89] : memref<2x1x96xf32, #tpu.memory_space<vmem>>, vector<1x1x96xf32>
    %194 = vector.shape_cast %193 : vector<1x1x96xf32> to vector<1x96xf32>
    %195 = vector.broadcast %194 : vector<1x96xf32> to vector<8x96xf32>
    %196 = arith.addf %192, %195 : vector<8x96xf32>
    %197 = vector.extract_strided_slice %196 {offsets = [0, 0], sizes = [8, 16], strides = [1, 1]} : vector<8x96xf32> to vector<8x16xf32>
    %198 = vector.extract_strided_slice %196 {offsets = [0, 32], sizes = [8, 16], strides = [1, 1]} : vector<8x96xf32> to vector<8x16xf32>
    %199 = vector.extract_strided_slice %196 {offsets = [0, 64], sizes = [8, 16], strides = [1, 1]} : vector<8x96xf32> to vector<8x16xf32>
    %200 = arith.truncf %197 : vector<8x16xf32> to vector<8x16xbf16>
    %201 = vector.shape_cast %200 : vector<8x16xbf16> to vector<1x8x16xbf16>
    %202 = arith.truncf %198 : vector<8x16xf32> to vector<8x16xbf16>
    %203 = vector.shape_cast %202 : vector<8x16xbf16> to vector<1x8x16xbf16>
    "tpu.trace_start"() <{level = 10 : i32, message = "bqd,bkd->bqk"}> : () -> ()
    %cst_90 = arith.constant dense<0.000000e+00> : vector<1x8x8xf32>
    %204 = tpu.matmul %201, %203, %cst_90 {dimension_numbers = #tpu.dot_dimension_numbers<[2], [2], [1], [1], [0, 0, 0, 1, 1, 1], [0], [0]>} : vector<1x8x16xbf16>, vector<1x8x16xbf16>, vector<1x8x8xf32> -> vector<1x8x8xf32>
    "tpu.trace_stop"() : () -> ()
    %205 = arith.addf %204, %2 : vector<1x8x8xf32>
    %cst_91 = arith.constant dense<0xFF800000> : vector<1x8xf32>
    %206 = vector.multi_reduction <maximumf>, %205, %cst_91 [2] : vector<1x8x8xf32> to vector<1x8xf32>
    %207 = vector.shape_cast %206 : vector<1x8xf32> to vector<1x8x1xf32>
    %208 = vector.broadcast %207 : vector<1x8x1xf32> to vector<1x8x8xf32>
    %209 = arith.subf %205, %208 : vector<1x8x8xf32>
    %210 = math.exp %209 : vector<1x8x8xf32>
    %cst_92 = arith.constant dense<0.000000e+00> : vector<1x8xf32>
    %211 = vector.multi_reduction <add>, %210, %cst_92 [2] : vector<1x8x8xf32> to vector<1x8xf32>
    %212 = vector.shape_cast %211 : vector<1x8xf32> to vector<1x8x1xf32>
    %213 = tpu.reciprocal %212 {approx = true} : vector<1x8x1xf32> -> vector<1x8x1xf32>
    %214 = vector.broadcast %213 : vector<1x8x1xf32> to vector<1x8x8xf32>
    %215 = arith.mulf %210, %214 : vector<1x8x8xf32>
    %216 = arith.truncf %215 : vector<1x8x8xf32> to vector<1x8x8xbf16>
    %217 = arith.truncf %199 : vector<8x16xf32> to vector<8x16xbf16>
    %218 = vector.shape_cast %217 : vector<8x16xbf16> to vector<1x8x16xbf16>
    "tpu.trace_start"() <{level = 10 : i32, message = "bqk,bkd->bqd"}> : () -> ()
    %cst_93 = arith.constant dense<0.000000e+00> : vector<1x8x16xf32>
    %219 = tpu.matmul %216, %218, %cst_93 {dimension_numbers = #tpu.dot_dimension_numbers<[2], [1], [1], [2], [0, 0, 0, 1, 1, 2], [0], [0]>} : vector<1x8x8xbf16>, vector<1x8x16xbf16>, vector<1x8x16xf32> -> vector<1x8x16xf32>
    "tpu.trace_stop"() : () -> ()
    %220 = vector.shape_cast %219 : vector<1x8x16xf32> to vector<8x16xf32>
    %221 = vector.extract_strided_slice %196 {offsets = [0, 16], sizes = [8, 16], strides = [1, 1]} : vector<8x96xf32> to vector<8x16xf32>
    %222 = vector.extract_strided_slice %196 {offsets = [0, 48], sizes = [8, 16], strides = [1, 1]} : vector<8x96xf32> to vector<8x16xf32>
    %223 = vector.extract_strided_slice %196 {offsets = [0, 80], sizes = [8, 16], strides = [1, 1]} : vector<8x96xf32> to vector<8x16xf32>
    %224 = arith.truncf %221 : vector<8x16xf32> to vector<8x16xbf16>
    %225 = vector.shape_cast %224 : vector<8x16xbf16> to vector<1x8x16xbf16>
    %226 = arith.truncf %222 : vector<8x16xf32> to vector<8x16xbf16>
    %227 = vector.shape_cast %226 : vector<8x16xbf16> to vector<1x8x16xbf16>
    "tpu.trace_start"() <{level = 10 : i32, message = "bqd,bkd->bqk"}> : () -> ()
    %cst_94 = arith.constant dense<0.000000e+00> : vector<1x8x8xf32>
    %228 = tpu.matmul %225, %227, %cst_94 {dimension_numbers = #tpu.dot_dimension_numbers<[2], [2], [1], [1], [0, 0, 0, 1, 1, 1], [0], [0]>} : vector<1x8x16xbf16>, vector<1x8x16xbf16>, vector<1x8x8xf32> -> vector<1x8x8xf32>
    "tpu.trace_stop"() : () -> ()
    %229 = arith.addf %228, %2 : vector<1x8x8xf32>
    %cst_95 = arith.constant dense<0xFF800000> : vector<1x8xf32>
    %230 = vector.multi_reduction <maximumf>, %229, %cst_95 [2] : vector<1x8x8xf32> to vector<1x8xf32>
    %231 = vector.shape_cast %230 : vector<1x8xf32> to vector<1x8x1xf32>
    %232 = vector.broadcast %231 : vector<1x8x1xf32> to vector<1x8x8xf32>
    %233 = arith.subf %229, %232 : vector<1x8x8xf32>
    %234 = math.exp %233 : vector<1x8x8xf32>
    %cst_96 = arith.constant dense<0.000000e+00> : vector<1x8xf32>
    %235 = vector.multi_reduction <add>, %234, %cst_96 [2] : vector<1x8x8xf32> to vector<1x8xf32>
    %236 = vector.shape_cast %235 : vector<1x8xf32> to vector<1x8x1xf32>
    %237 = tpu.reciprocal %236 {approx = true} : vector<1x8x1xf32> -> vector<1x8x1xf32>
    %238 = vector.broadcast %237 : vector<1x8x1xf32> to vector<1x8x8xf32>
    %239 = arith.mulf %234, %238 : vector<1x8x8xf32>
    %240 = arith.truncf %239 : vector<1x8x8xf32> to vector<1x8x8xbf16>
    %241 = arith.truncf %223 : vector<8x16xf32> to vector<8x16xbf16>
    %242 = vector.shape_cast %241 : vector<8x16xbf16> to vector<1x8x16xbf16>
    "tpu.trace_start"() <{level = 10 : i32, message = "bqk,bkd->bqd"}> : () -> ()
    %cst_97 = arith.constant dense<0.000000e+00> : vector<1x8x16xf32>
    %243 = tpu.matmul %240, %242, %cst_97 {dimension_numbers = #tpu.dot_dimension_numbers<[2], [1], [1], [2], [0, 0, 0, 1, 1, 2], [0], [0]>} : vector<1x8x8xbf16>, vector<1x8x16xbf16>, vector<1x8x16xf32> -> vector<1x8x16xf32>
    "tpu.trace_stop"() : () -> ()
    %244 = vector.shape_cast %243 : vector<1x8x16xf32> to vector<8x16xf32>
    %245 = tpu.concatenate %220, %244 in 1 : vector<8x16xf32>, vector<8x16xf32> -> vector<8x32xf32>
    %246 = arith.truncf %245 : vector<8x32xf32> to vector<8x32xbf16>
    %c1_98 = arith.constant 1 : index
    %c0_99 = arith.constant 0 : index
    %c0_100 = arith.constant 0 : index
    %247 = vector.load %arg7[%c1_98, %c0_99, %c0_100] : memref<2x32x32xbf16, #tpu.memory_space<vmem>>, vector<1x32x32xbf16>
    %248 = vector.shape_cast %247 : vector<1x32x32xbf16> to vector<32x32xbf16>
    %cst_101 = arith.constant dense<0.000000e+00> : vector<8x32xf32>
    %249 = tpu.matmul %246, %248, %cst_101 {dimension_numbers = #tpu.dot_dimension_numbers<[1], [0], [0], [1], [0, 0, 1, 1], [], []>} : vector<8x32xbf16>, vector<32x32xbf16>, vector<8x32xf32> -> vector<8x32xf32>
    %c1_102 = arith.constant 1 : index
    %c0_103 = arith.constant 0 : index
    %c0_104 = arith.constant 0 : index
    %250 = vector.load %arg8[%c1_102, %c0_103, %c0_104] : memref<2x1x32xf32, #tpu.memory_space<vmem>>, vector<1x1x32xf32>
    %251 = vector.shape_cast %250 : vector<1x1x32xf32> to vector<1x32xf32>
    %252 = vector.broadcast %251 : vector<1x32xf32> to vector<8x32xf32>
    %253 = arith.addf %249, %252 : vector<8x32xf32>
    %254 = arith.addf %185, %253 : vector<8x32xf32>
    %c1_105 = arith.constant 1 : index
    %c0_106 = arith.constant 0 : index
    %c0_107 = arith.constant 0 : index
    %255 = vector.load %arg9[%c1_105, %c0_106, %c0_107] : memref<2x1x32xf32, #tpu.memory_space<vmem>>, vector<1x1x32xf32>
    %256 = vector.shape_cast %255 : vector<1x1x32xf32> to vector<1x32xf32>
    %c1_108 = arith.constant 1 : index
    %c0_109 = arith.constant 0 : index
    %c0_110 = arith.constant 0 : index
    %257 = vector.load %arg10[%c1_108, %c0_109, %c0_110] : memref<2x1x32xf32, #tpu.memory_space<vmem>>, vector<1x1x32xf32>
    %258 = vector.shape_cast %257 : vector<1x1x32xf32> to vector<1x32xf32>
    %cst_111 = arith.constant dense<0.000000e+00> : vector<8xf32>
    %259 = vector.multi_reduction <add>, %254, %cst_111 [1] : vector<8x32xf32> to vector<8xf32>
    %260 = vector.shape_cast %259 : vector<8xf32> to vector<8x1xf32>
    %261 = arith.mulf %254, %254 : vector<8x32xf32>
    %cst_112 = arith.constant dense<0.000000e+00> : vector<8xf32>
    %262 = vector.multi_reduction <add>, %261, %cst_112 [1] : vector<8x32xf32> to vector<8xf32>
    %263 = vector.shape_cast %262 : vector<8xf32> to vector<8x1xf32>
    %cst_113 = arith.constant 3.125000e-02 : f32
    %264 = vector.broadcast %cst_113 : f32 to vector<8x1xf32>
    %265 = arith.mulf %260, %264 : vector<8x1xf32>
    %cst_114 = arith.constant 3.125000e-02 : f32
    %266 = vector.broadcast %cst_114 : f32 to vector<8x1xf32>
    %267 = arith.mulf %263, %266 : vector<8x1xf32>
    %268 = arith.mulf %265, %265 : vector<8x1xf32>
    %269 = arith.subf %267, %268 : vector<8x1xf32>
    %cst_115 = arith.constant 0.000000e+00 : f32
    %270 = vector.broadcast %cst_115 : f32 to vector<8x1xf32>
    %271 = arith.maximumf %269, %270 : vector<8x1xf32>
    %272 = vector.broadcast %265 : vector<8x1xf32> to vector<8x32xf32>
    %273 = arith.subf %254, %272 : vector<8x32xf32>
    %cst_116 = arith.constant 9.99999996E-13 : f32
    %274 = vector.broadcast %cst_116 : f32 to vector<8x1xf32>
    %275 = arith.addf %271, %274 : vector<8x1xf32>
    %276 = math.rsqrt %275 : vector<8x1xf32>
    %277 = vector.broadcast %276 : vector<8x1xf32> to vector<8x32xf32>
    %278 = arith.mulf %273, %277 : vector<8x32xf32>
    %279 = vector.broadcast %256 : vector<1x32xf32> to vector<8x32xf32>
    %280 = arith.mulf %278, %279 : vector<8x32xf32>
    %281 = vector.broadcast %258 : vector<1x32xf32> to vector<8x32xf32>
    %282 = arith.addf %280, %281 : vector<8x32xf32>
    %283 = arith.truncf %282 : vector<8x32xf32> to vector<8x32xbf16>
    %c1_117 = arith.constant 1 : index
    %c0_118 = arith.constant 0 : index
    %c0_119 = arith.constant 0 : index
    %284 = vector.load %arg11[%c1_117, %c0_118, %c0_119] : memref<2x32x64xbf16, #tpu.memory_space<vmem>>, vector<1x32x64xbf16>
    %285 = vector.shape_cast %284 : vector<1x32x64xbf16> to vector<32x64xbf16>
    %cst_120 = arith.constant dense<0.000000e+00> : vector<8x64xf32>
    %286 = tpu.matmul %283, %285, %cst_120 {dimension_numbers = #tpu.dot_dimension_numbers<[1], [0], [0], [1], [0, 0, 1, 1], [], []>} : vector<8x32xbf16>, vector<32x64xbf16>, vector<8x64xf32> -> vector<8x64xf32>
    %c1_121 = arith.constant 1 : index
    %c0_122 = arith.constant 0 : index
    %c0_123 = arith.constant 0 : index
    %287 = vector.load %arg12[%c1_121, %c0_122, %c0_123] : memref<2x1x64xf32, #tpu.memory_space<vmem>>, vector<1x1x64xf32>
    %288 = vector.shape_cast %287 : vector<1x1x64xf32> to vector<1x64xf32>
    %289 = vector.broadcast %288 : vector<1x64xf32> to vector<8x64xf32>
    %290 = arith.addf %286, %289 : vector<8x64xf32>
    %291 = arith.mulf %290, %290 : vector<8x64xf32>
    %292 = arith.mulf %290, %291 : vector<8x64xf32>
    %cst_124 = arith.constant 4.471500e-02 : f32
    %293 = vector.broadcast %cst_124 : f32 to vector<8x64xf32>
    %294 = arith.mulf %293, %292 : vector<8x64xf32>
    %295 = arith.addf %290, %294 : vector<8x64xf32>
    %cst_125 = arith.constant 0.797884583 : f32
    %296 = vector.broadcast %cst_125 : f32 to vector<8x64xf32>
    %297 = arith.mulf %296, %295 : vector<8x64xf32>
    %298 = math.tanh %297 : vector<8x64xf32>
    %cst_126 = arith.constant 1.000000e+00 : f32
    %299 = vector.broadcast %cst_126 : f32 to vector<8x64xf32>
    %300 = arith.addf %299, %298 : vector<8x64xf32>
    %cst_127 = arith.constant 5.000000e-01 : f32
    %301 = vector.broadcast %cst_127 : f32 to vector<8x64xf32>
    %302 = arith.mulf %301, %300 : vector<8x64xf32>
    %303 = arith.mulf %290, %302 : vector<8x64xf32>
    %304 = arith.truncf %303 : vector<8x64xf32> to vector<8x64xbf16>
    %c1_128 = arith.constant 1 : index
    %c0_129 = arith.constant 0 : index
    %c0_130 = arith.constant 0 : index
    %305 = vector.load %arg13[%c1_128, %c0_129, %c0_130] : memref<2x64x32xbf16, #tpu.memory_space<vmem>>, vector<1x64x32xbf16>
    %306 = vector.shape_cast %305 : vector<1x64x32xbf16> to vector<64x32xbf16>
    %cst_131 = arith.constant dense<0.000000e+00> : vector<8x32xf32>
    %307 = tpu.matmul %304, %306, %cst_131 {dimension_numbers = #tpu.dot_dimension_numbers<[1], [0], [0], [1], [0, 0, 1, 1], [], []>} : vector<8x64xbf16>, vector<64x32xbf16>, vector<8x32xf32> -> vector<8x32xf32>
    %c1_132 = arith.constant 1 : index
    %c0_133 = arith.constant 0 : index
    %c0_134 = arith.constant 0 : index
    %308 = vector.load %arg14[%c1_132, %c0_133, %c0_134] : memref<2x1x32xf32, #tpu.memory_space<vmem>>, vector<1x1x32xf32>
    %309 = vector.shape_cast %308 : vector<1x1x32xf32> to vector<1x32xf32>
    %310 = vector.broadcast %309 : vector<1x32xf32> to vector<8x32xf32>
    %311 = arith.addf %307, %310 : vector<8x32xf32>
    %312 = arith.addf %282, %311 : vector<8x32xf32>
    %c1_135 = arith.constant 1 : index
    %c0_136 = arith.constant 0 : index
    %c0_137 = arith.constant 0 : index
    %313 = vector.load %arg15[%c1_135, %c0_136, %c0_137] : memref<2x1x32xf32, #tpu.memory_space<vmem>>, vector<1x1x32xf32>
    %314 = vector.shape_cast %313 : vector<1x1x32xf32> to vector<1x32xf32>
    %c1_138 = arith.constant 1 : index
    %c0_139 = arith.constant 0 : index
    %c0_140 = arith.constant 0 : index
    %315 = vector.load %arg16[%c1_138, %c0_139, %c0_140] : memref<2x1x32xf32, #tpu.memory_space<vmem>>, vector<1x1x32xf32>
    %316 = vector.shape_cast %315 : vector<1x1x32xf32> to vector<1x32xf32>
    %cst_141 = arith.constant dense<0.000000e+00> : vector<8xf32>
    %317 = vector.multi_reduction <add>, %312, %cst_141 [1] : vector<8x32xf32> to vector<8xf32>
    %318 = vector.shape_cast %317 : vector<8xf32> to vector<8x1xf32>
    %319 = arith.mulf %312, %312 : vector<8x32xf32>
    %cst_142 = arith.constant dense<0.000000e+00> : vector<8xf32>
    %320 = vector.multi_reduction <add>, %319, %cst_142 [1] : vector<8x32xf32> to vector<8xf32>
    %321 = vector.shape_cast %320 : vector<8xf32> to vector<8x1xf32>
    %cst_143 = arith.constant 3.125000e-02 : f32
    %322 = vector.broadcast %cst_143 : f32 to vector<8x1xf32>
    %323 = arith.mulf %318, %322 : vector<8x1xf32>
    %cst_144 = arith.constant 3.125000e-02 : f32
    %324 = vector.broadcast %cst_144 : f32 to vector<8x1xf32>
    %325 = arith.mulf %321, %324 : vector<8x1xf32>
    %326 = arith.mulf %323, %323 : vector<8x1xf32>
    %327 = arith.subf %325, %326 : vector<8x1xf32>
    %cst_145 = arith.constant 0.000000e+00 : f32
    %328 = vector.broadcast %cst_145 : f32 to vector<8x1xf32>
    %329 = arith.maximumf %327, %328 : vector<8x1xf32>
    %330 = vector.broadcast %323 : vector<8x1xf32> to vector<8x32xf32>
    %331 = arith.subf %312, %330 : vector<8x32xf32>
    %cst_146 = arith.constant 9.99999996E-13 : f32
    %332 = vector.broadcast %cst_146 : f32 to vector<8x1xf32>
    %333 = arith.addf %329, %332 : vector<8x1xf32>
    %334 = math.rsqrt %333 : vector<8x1xf32>
    %335 = vector.broadcast %334 : vector<8x1xf32> to vector<8x32xf32>
    %336 = arith.mulf %331, %335 : vector<8x32xf32>
    %337 = vector.broadcast %314 : vector<1x32xf32> to vector<8x32xf32>
    %338 = arith.mulf %336, %337 : vector<8x32xf32>
    %339 = vector.broadcast %316 : vector<1x32xf32> to vector<8x32xf32>
    %340 = arith.addf %338, %339 : vector<8x32xf32>
    %341 = vector.extract_strided_slice %340 {offsets = [0, 0], sizes = [1, 32], strides = [1, 1]} : vector<8x32xf32> to vector<1x32xf32>
    %342 = vector.shape_cast %341 : vector<1x32xf32> to vector<1x1x32xf32>
    %c0_147 = arith.constant 0 : index
    %c2 = arith.constant 2 : index
    %c0_148 = arith.constant 0 : index
    %343 = vector.load %arg17[%c0_147, %c2, %c0_148] : memref<1x3x32xf32, #tpu.memory_space<vmem>>, vector<1x1x32xf32>
    tpu.vector_store %arg17[%c0_147, %c2, %c0_148], %342 {strides = array<i32>} : memref<1x3x32xf32, #tpu.memory_space<vmem>>, vector<1x1x32xf32>,
    return
  }
  func.func @transform_0(%arg0: i32) -> (i32, i32, i32) {
    %c0_i32 = arith.constant 0 : i32
    %c0_i32_0 = arith.constant 0 : i32
    %c0_i32_1 = arith.constant 0 : i32
    return %arg0, %c0_i32, %c0_i32_0 : i32, i32, i32
  }
  func.func @transform_1(%arg0: i32) -> (i32, i32, i32) {
    %c0_i32 = arith.constant 0 : i32
    %c0_i32_0 = arith.constant 0 : i32
    %c0_i32_1 = arith.constant 0 : i32
    return %arg0, %c0_i32, %c0_i32_0 : i32, i32, i32
  }
  func.func @transform_2(%arg0: i32) -> (i32, i32) {
    %c0_i32 = arith.constant 0 : i32
    %c0_i32_0 = arith.constant 0 : i32
    %c0_i32_1 = arith.constant 0 : i32
    return %c0_i32, %c0_i32_0 : i32, i32
  }
  func.func @transform_3(%arg0: i32) -> (i32, i32) {
    %c0_i32 = arith.constant 0 : i32
    %c0_i32_0 = arith.constant 0 : i32
    %c0_i32_1 = arith.constant 0 : i32
    return %c0_i32, %c0_i32_0 : i32, i32
  }
  func.func @transform_4(%arg0: i32) -> (i32, i32, i32) {
    %c0_i32 = arith.constant 0 : i32
    %c0_i32_0 = arith.constant 0 : i32
    %c0_i32_1 = arith.constant 0 : i32
    %c0_i32_2 = arith.constant 0 : i32
    return %c0_i32, %c0_i32_0, %c0_i32_1 : i32, i32, i32
  }
  func.func @transform_5(%arg0: i32) -> (i32, i32, i32) {
    %c0_i32 = arith.constant 0 : i32
    %c0_i32_0 = arith.constant 0 : i32
    %c0_i32_1 = arith.constant 0 : i32
    %c0_i32_2 = arith.constant 0 : i32
    return %c0_i32, %c0_i32_0, %c0_i32_1 : i32, i32, i32
  }
  func.func @transform_6(%arg0: i32) -> (i32, i32, i32) {
    %c0_i32 = arith.constant 0 : i32
    %c0_i32_0 = arith.constant 0 : i32
    %c0_i32_1 = arith.constant 0 : i32
    %c0_i32_2 = arith.constant 0 : i32
    return %c0_i32, %c0_i32_0, %c0_i32_1 : i32, i32, i32
  }
  func.func @transform_7(%arg0: i32) -> (i32, i32, i32) {
    %c0_i32 = arith.constant 0 : i32
    %c0_i32_0 = arith.constant 0 : i32
    %c0_i32_1 = arith.constant 0 : i32
    %c0_i32_2 = arith.constant 0 : i32
    return %c0_i32, %c0_i32_0, %c0_i32_1 : i32, i32, i32
  }
  func.func @transform_8(%arg0: i32) -> (i32, i32, i32) {
    %c0_i32 = arith.constant 0 : i32
    %c0_i32_0 = arith.constant 0 : i32
    %c0_i32_1 = arith.constant 0 : i32
    %c0_i32_2 = arith.constant 0 : i32
    return %c0_i32, %c0_i32_0, %c0_i32_1 : i32, i32, i32
  }
  func.func @transform_9(%arg0: i32) -> (i32, i32, i32) {
    %c0_i32 = arith.constant 0 : i32
    %c0_i32_0 = arith.constant 0 : i32
    %c0_i32_1 = arith.constant 0 : i32
    %c0_i32_2 = arith.constant 0 : i32
    return %c0_i32, %c0_i32_0, %c0_i32_1 : i32, i32, i32
  }
  func.func @transform_10(%arg0: i32) -> (i32, i32, i32) {
    %c0_i32 = arith.constant 0 : i32
    %c0_i32_0 = arith.constant 0 : i32
    %c0_i32_1 = arith.constant 0 : i32
    %c0_i32_2 = arith.constant 0 : i32
    return %c0_i32, %c0_i32_0, %c0_i32_1 : i32, i32, i32
  }
  func.func @transform_11(%arg0: i32) -> (i32, i32, i32) {
    %c0_i32 = arith.constant 0 : i32
    %c0_i32_0 = arith.constant 0 : i32
    %c0_i32_1 = arith.constant 0 : i32
    %c0_i32_2 = arith.constant 0 : i32
    return %c0_i32, %c0_i32_0, %c0_i32_1 : i32, i32, i32
  }
  func.func @transform_12(%arg0: i32) -> (i32, i32, i32) {
    %c0_i32 = arith.constant 0 : i32
    %c0_i32_0 = arith.constant 0 : i32
    %c0_i32_1 = arith.constant 0 : i32
    %c0_i32_2 = arith.constant 0 : i32
    return %c0_i32, %c0_i32_0, %c0_i32_1 : i32, i32, i32
  }
  func.func @transform_13(%arg0: i32) -> (i32, i32, i32) {
    %c0_i32 = arith.constant 0 : i32
    %c0_i32_0 = arith.constant 0 : i32
    %c0_i32_1 = arith.constant 0 : i32
    %c0_i32_2 = arith.constant 0 : i32
    return %c0_i32, %c0_i32_0, %c0_i32_1 : i32, i32, i32
  }
  func.func @transform_14(%arg0: i32) -> (i32, i32, i32) {
    %c0_i32 = arith.constant 0 : i32
    %c0_i32_0 = arith.constant 0 : i32
    %c0_i32_1 = arith.constant 0 : i32
    %c0_i32_2 = arith.constant 0 : i32
    return %c0_i32, %c0_i32_0, %c0_i32_1 : i32, i32, i32
  }
  func.func @transform_15(%arg0: i32) -> (i32, i32, i32) {
    %c0_i32 = arith.constant 0 : i32
    %c0_i32_0 = arith.constant 0 : i32
    %c0_i32_1 = arith.constant 0 : i32
    %c0_i32_2 = arith.constant 0 : i32
    return %c0_i32, %c0_i32_0, %c0_i32_1 : i32, i32, i32
  }
  func.func @transform_16(%arg0: i32) -> (i32, i32, i32) {
    %c0_i32 = arith.constant 0 : i32
    %c0_i32_0 = arith.constant 0 : i32
    %c0_i32_1 = arith.constant 0 : i32
    return %arg0, %c0_i32, %c0_i32_0 : i32, i32, i32
  }
}

</mosaic_0001>

<bundles_post_ra>
// kernel: style_extractor_forward.1
= control target key start
LH: loop header
LB: loop body
LE: loop exit
PB: predicated region body
PF: predicated region fallthrough
CT: control target
= control target key end

     0   :  { %s2246_s21 = smov 0   ;;  %s2527_s0 = inlined_call_operand.vmem [shape: f32[2,8,32], index: 0, kind: input, shape index: {}]   ;;  %s2528_s1 = inlined_call_operand.vmem [shape: f32[2,1,8], index: 1, kind: input, shape index: {}]   ;;  %s2529_s2 = inlined_call_operand.vmem [shape: f32[1,32], index: 2, kind: input, shape index: {}]   ;;  %s2530_s3 = inlined_call_operand.vmem [shape: f32[1,32], index: 3, kind: input, shape index: {}]   ;;  %s2531_s4 = inlined_call_operand.vmem [shape: bf16[2,32,96], index: 4, kind: input, shape index: {}]   ;;  %s2532_s5 = inlined_call_operand.vmem [shape: f32[2,1,96], index: 5, kind: input, shape index: {}]   ;;  %s2533_s6 = inlined_call_operand.vmem [shape: bf16[2,32,32], index: 6, kind: input, shape index: {}]   ;;  %s2534_s7 = inlined_call_operand.vmem [shape: f32[2,1,32], index: 7, kind: input, shape index: {}]   ;;  %s2535_s8 = inlined_call_operand.vmem [shape: f32[2,1,32], index: 8, kind: input, shape index: {}]   ;;  %s2536_s9 = inlined_call_operand.vmem [shape: f32[2,1,32], index: 9, kind: input, shape index: {}]   ;;  %s2537_s10 = inlined_call_operand.vmem [shape: bf16[2,32,64], index: 10, kind: input, shape index: {}]   ;;  %s2538_s11 = inlined_call_operand.vmem [shape: f32[2,1,64], index: 11, kind: input, shape index: {}]   ;;  %s2539_s12 = inlined_call_operand.vmem [shape: bf16[2,64,32], index: 12, kind: input, shape index: {}]   ;;  %s2540_s13 = inlined_call_operand.vmem [shape: f32[2,1,32], index: 13, kind: input, shape index: {}]   ;;  %s2541_s14 = inlined_call_operand.vmem [shape: f32[2,1,32], index: 14, kind: input, shape index: {}]   ;;  %s2542_s15 = inlined_call_operand.vmem [shape: f32[2,1,32], index: 15, kind: input, shape index: {}]   ;;  %s2543_s16 = inlined_call_operand.vmem [shape: f32[2,3,32], index: 16, kind: output, shape index: {}]  }
   0x1   :  { %2544 = sst [smem:[#allocation2_spill]] %s2527_s0 }
   0x2 LB: > { %s1823_s22 = sadd.s32 4294967295, %s2151_s21   ;;  %p1827_p0 = scmp.ge.s32.totalorder %s2151_s21, 1  ;;  %s2151_s21 = sphi %s2246_s21, %s26_s21  }
   0x3   : > { %p469_p1 = scmp.lt.s32.totalorder %s2151_s21, 3 }
   0x5   : > { %p470_p2 = pnand %p1827_p0, %p469_p1 }
   0x6   : > { %p520_p3 = scmp.lt.s32.totalorder (!%p470_p2), %s1823_s22, 1  ;;  %s2545_s26 = sld [smem:[#allocation2_spill]] (!%p470_p2) }
   0x7   : > { %473 = sbr.rel (%p470_p2) target bundleno = 4412 (0x113c), region = 84  ;;  %s2155_s29 = smov (!%p470_p2), 112  }
   0x8   : > { %s2156_s30 = smov (!%p470_p2), 96   ;;  %s2157_s0 = smov (!%p470_p2), 80  }
   0x9   : > { %s2159_s20 = smov (!%p470_p2), 64   ;;  %s2160_s28 = smov (!%p470_p2), 16  }
   0xc   : > { %s2547_s22 = smov (!%p520_p3, %s1823_s22), 1  ;;  %vm542_vm0 = vcmask 261120   ;;  %v2095_v4 = vld [vmem:[%s2531_s4 + $0x8] sm:$0xff]   ;;  %v2153_v5 = vmov 0.0   ;;  %vm2154_vm1 = vmmov 0   ;;  %v2096_v6 = vld [vmem:[%s2531_s4] sm:$0xff]  }
   0xd   : > { %s1828_s23 = sshll.u32 %s2547_s22, 3  ;;  %1959 = vmatprep.subr.bf16.mxu1 %v2153_v5  ;;  %1963 = vmatprep.mubr.msk.bf16.mxu1 %vm2154_vm1, %v2153_v5  ;;  %v1831_v17 = vld [vmem:[%s2529_s2] ss:$0 sm:$0xff]  ;;  %s1829_s19 = sshll.u32 %s2547_s22, 2  ;;  %vm573_vm2 = vcmask 253952   ;;  %vm646_vm3 = vcmask 130048  }
   0xe   : > { %s523_s27 = scalar_lea.vmem %s2545_s26, %s1828_s23  ;;  %1960 = vmatpush3.bf16.msra.mxu1 %v2095_v4  ;;  %1973 = vmatprep.subr.bf16.mxu0 %v2153_v5  ;;  %v1832_v19 = vld [vmem:[%s2530_s3] ss:$0 sm:$0xff]  ;;  %s2286_s26 = scalar_lea.vmem %s2543_s16, %s1829_s19  ;;  %vm693_vm4 = vcmask 64512   ;;  %vm711_vm5 = vcmask 1043456   ;;  %vm1086_vm6 = vcmask 523264  }
   0xf   : > { %v539_v0 = vld [vmem:[%s523_s27] sm:$0xff]  ;;  %1961 = vmatprep.subr.bf16.mxu1 %v2153_v5  ;;  %1975 = vmatprep.mubr.msk.bf16.mxu0 %vm2154_vm1, %v2153_v5  ;;  %s526_s19 = scalar_lea.vmem %s2528_s1, %s2547_s22  ;;  %s2158_s22 = smov 48  }
  0x10   : > { %v543_v1 = vsel %vm542_vm0, %v539_v0, 0.0  ;;  %v546_v2 = vmul.f32 %v539_v0, %v539_v0  ;;  %v1833_v23 = vld [vmem:[%s2532_s5] ss:$0 sm:$0xff] }
  0x11   : > { %544 = vadd.xlane.f32.xlu0 %v543_v1  ;;  %v2318_v35 = vld [vmem:[%s526_s19] ss:$0 sm:$0xff] }
  0x12   : > { %v547_v3 = vsel %vm542_vm0, %v546_v2, 0.0  ;;  %1962 = vmatpush3.bf16.msra.mxu1 %v2096_v6 }
  0x13   : > { %1967 = vmatprep.subr.bf16.mxu1 %v2153_v5 }
  0x15   : > { %548 = vadd.xlane.f32.xlu0 %v547_v3 }
  0x9a   : > { %v545_v7 = vpop.xlane.xlu0 %544 }
  0x9b   : > { %v550_v8 = vmul.f32 0.03125, %v545_v7  ;;  %v2097_v7 = vld [vmem:[%s2533_s6 + $0x8] sm:$0xff]  }
  0x9d   : > { %v552_v10 = vmul.f32 %v550_v8, %v550_v8  ;;  %v555_v15 = vsub.f32 %v539_v0, %v550_v8  ;;  %v2098_v8 = vld [vmem:[%s2533_s6] sm:$0xff]  }
  0x9e   : > { %v549_v9 = vpop.xlane.xlu0 %548 }
  0x9f   : > { %v551_v11 = vmul.f32 0.03125, %v549_v9 }
  0xa1   : > { %v553_v12 = vsub.f32 %v551_v11, %v552_v10 }
  0xa3   : > { %v554_v13 = vmax.f32 %v553_v12, 0.0 }
  0xa5   : > { %v556_v14 = vadd.f32 1e-12, %v554_v13 }
  0xa7   : > { %2115 = vrsqrt.f32 %v556_v14 }
  0xb4   : > { %v2116_v16 = vpop.eup %2115 }
  0xb5   : > { %v558_v18 = vmul.f32 %v2116_v16, %v555_v15 }
  0xb7   : > { %v565_v20 = vmul.f32 %v1831_v17, %v558_v18 }
  0xb9   : > { %v2288_v21 = vadd.f32 %v1832_v19, %v565_v20  ;;  %v1841_v20 = vld [vmem:[%s2534_s7] ss:$0 sm:$0xff] }
  0xbb   : > { %574 = vst.msk [vmem:[%s2286_s26] sm:$0x1] %vm573_vm2, %v2288_v21  ;;  %v575_v22 = vpack.c.bf16 %v2288_v21, %v2288_v21 }
  0xbd   : > { %1964 = vmatmul.mubr.msk.bf16.vlgmr.msra.gmra.mxu1 %vm542_vm0, %v575_v22 }
  0xbe   : > { %1969 = vmatprep.mubr.msk.bf16.mxu1 %vm2154_vm1, %v2153_v5 }
 0x17d   : > { %v636_v24 = vpop.f32.mrf.mxu1 }
 0x17e   : > { %v637_v25 = vadd.f32 %v1833_v23, %v636_v24 }
 0x17f   : > { %v1965_v26 = vpop.f32.mrf.mxu1 }
 0x180   : > { %v642_v27 = vpack.c.bf16 %v637_v25, %v637_v25 }
 0x181   : > { %v639_v28 = vpop.f32.mrf.mxu1 }
 0x182   : > { %755 = vrot.lane.b32.xlu0 %v642_v27, %s2155_s29  ;;  %644 = vrot.lane.b32.xlu1 %v642_v27, %s2156_s30 }
 0x183   : > { %v1966_v29 = vpop.f32.mrf.mxu1 }
 0x186   : > { %757 = vrot.lane.b32.xlu1 %v642_v27, %s2157_s0 }
 0x1f4   : > { %v645_v30 = vpop.permute.xlu1 %644  ;;  %v756_v34 = vpop.permute.xlu0 %755 }
 0x1f5   : > { %v651_v31 = vsel %vm646_vm3, %v645_v30, 0 }
 0x1f6   : > { %1968 = vmatpush3.bf16.xpose.msra.mxu1 %v651_v31  ;;  %v2099_v31 = vld [vmem:[%s2537_s10 + $0x8] sm:$0xff]  }
 0x1f7   : > { %1979 = vmatprep.subr.bf16.mxu1 %v2153_v5 }
 0x1f8   : > { %v758_v32 = vpop.permute.xlu1 %757 }
 0x1f9   : > { %v763_v33 = vsel %vm646_vm3, %v758_v32, 0  ;;  %v2100_v32 = vld [vmem:[%s2537_s10] sm:$0xff]  }
 0x1fd   : > { %1970 = vmatmul.mubr.msk.bf16.vlgmr.msra.gmra.mxu1 %vm646_vm3, %v642_v27 }
 0x1fe   : > { %1980 = vmatpush3.bf16.xpose.msra.mxu1 %v763_v33  ;;  %1981 = vmatprep.mubr.msk.bf16.mxu1 %vm2154_vm1, %v2153_v5 }
 0x1ff   : > { %1991 = vmatprep.subr.bf16.mxu1 %v2153_v5 }
 0x205   : > { %1982 = vmatmul.mubr.msk.bf16.vlgmr.msra.gmra.mxu1 %vm646_vm3, %v756_v34 }
 0x206   : > { %1995 = vmatprep.mubr.msk.bf16.mxu1 %vm2154_vm1, %v2153_v5  ;;  %1992 = vmatpush3.bf16.msra.mxu1 %v2097_v7 }
 0x207   : > { %1993 = vmatprep.subr.bf16.mxu1 %v2153_v5 }
 0x20a   : > { %1994 = vmatpush3.bf16.msra.mxu1 %v2098_v8 }
 0x20b   : > { %2007 = vmatprep.subr.bf16.mxu1 %v2153_v5 }
 0x2bd   : > { %v687_v36 = vpop.f32.mrf.mxu1 }
 0x2be   : > { %v688_v37 = vadd.f32 %v2318_v35, %v687_v36 }
 0x2bf   : > { %v1971_v38 = vpop.f32.mrf.mxu1 }
 0x2c0   : > { %v694_v39 = vsel %vm693_vm4, %v688_v37, -inf }
 0x2c1   : > { %695 = vmax.xlane.f32.xlu1 %v694_v39  ;;  %v690_v40 = vpop.f32.mrf.mxu1 }
 0x2c3   : > { %v1972_v41 = vpop.f32.mrf.mxu1 }
 0x2c5   : > { %v799_v42 = vpop.f32.mrf.mxu1 }
 0x2c6   : > { %v800_v43 = vadd.f32 %v2318_v35, %v799_v42 }
 0x2c7   : > { %v1983_v44 = vpop.f32.mrf.mxu1 }
 0x2c8   : > { %v805_v45 = vsel %vm693_vm4, %v800_v43, -inf }
 0x2c9   : > { %806 = vmax.xlane.f32.xlu0 %v805_v45  ;;  %v802_v46 = vpop.f32.mrf.mxu1  ;;  %v1846_v45 = vld [vmem:[%s2536_s9] ss:$0 sm:$0xff] }
 0x2cb   : > { %v1984_v47 = vpop.f32.mrf.mxu1 }
 0x2df   : > { %817 = vrot.lane.b32.xlu0 %v642_v27, %s2158_s22 }
 0x34a   : > { %v696_v48 = vpop.xlane.xlu1 %695 }
 0x34b   : > { %v697_v49 = vsub.f32 %v688_v37, %v696_v48 }
 0x34d   : > { %v698_v50 = vmul.f32 1.442695, %v697_v49  ;;  %v2101_v49 = vld [vmem:[%s2539_s12 + $0x18] sm:$0xff]  }
 0x34f   : > { %2117 = vpow2.f32 %v698_v50  ;;  %v2102_v50 = vld [vmem:[%s2539_s12 + $0x10] sm:$0xff]  }
 0x352   : > { %v807_v51 = vpop.xlane.xlu0 %806 }
 0x353   : > { %v808_v52 = vsub.f32 %v800_v43, %v807_v51  ;;  %v1845_v43 = vld [vmem:[%s2535_s8] ss:$0 sm:$0xff]  ;;  %v2103_v51 = vld [vmem:[%s2539_s12 + $0x8] sm:$0xff]  }
 0x355   : > { %v809_v53 = vmul.f32 1.442695, %v808_v52  ;;  %v2104_v52 = vld [vmem:[%s2539_s12] sm:$0xff]  }
 0x356   : > { %v818_v0 = vpop.permute.xlu0 %817 }
 0x357   : > { %2119 = vpow2.f32 %v809_v53  ;;  %v823_v2 = vsel %vm711_vm5, %v818_v0, 0  ;;  %v1847_v53 = vld [vmem:[%s2538_s11] ss:$0 sm:$0xff] }
 0x35c   : > { %v2118_v54 = vpop.eup %2117 }
 0x35d   : > { %v700_v55 = vsel %vm693_vm4, %v2118_v54, 0.0 }
 0x35e   : > { %701 = vadd.xlane.f32.xlu1 %v700_v55 }
 0x364   : > { %v2120_v56 = vpop.eup %2119 }
 0x365   : > { %v811_v57 = vsel %vm693_vm4, %v2120_v56, 0.0 }
 0x366   : > { %812 = vadd.xlane.f32.xlu1 %v811_v57 }
 0x377   : > { %706 = vrot.lane.b32.xlu1 %v642_v27, %s2159_s20 }
 0x3e7   : > { %v702_v58 = vpop.xlane.xlu1 %701 }
 0x3e8   : > { %2121 = vrcp.f32 %v702_v58 }
 0x3ef   : > { %v813_v59 = vpop.xlane.xlu1 %812 }
 0x3f0   : > { %2123 = vrcp.f32 %v813_v59 }
 0x3f3   : > { %v707_v60 = vpop.permute.xlu1 %706 }
 0x3f4   : > { %v713_v61 = vsel %vm711_vm5, %v707_v60, 0 }
 0x3f5   : > { %v2122_v62 = vpop.eup %2121  ;;  %1974 = vmatpush3.bf16.msra.mxu0 %v713_v61 }
 0x3f6   : > { %1985 = vmatprep.subr.bf16.mxu0 %v2153_v5  ;;  %v704_v63 = vmul.f32 %v2122_v62, %v2118_v54 }
 0x3f8   : > { %v705_v1 = vpack.c.bf16 %v704_v63, %v704_v63 }
 0x3fa   : > { %1976 = vmatmul.mubr.msk.bf16.vlgmr.msra.gmra.mxu0 %vm693_vm4, %v705_v1 }
 0x3fb   : > { %1986 = vmatpush3.bf16.msra.mxu0 %v823_v2  ;;  %1987 = vmatprep.mubr.msk.bf16.mxu0 %vm2154_vm1, %v2153_v5 }
 0x3fc   : > { %1999 = vmatprep.subr.bf16.mxu0 %v2153_v5 }
 0x3fd   : > { %v2124_v3 = vpop.eup %2123 }
 0x3fe   : > { %v815_v4 = vmul.f32 %v2124_v3, %v2120_v56 }
 0x400   : > { %v816_v6 = vpack.c.bf16 %v815_v4, %v815_v4 }
 0x402   : > { %1988 = vmatmul.mubr.msk.bf16.vlgmr.msra.gmra.mxu0 %vm693_vm4, %v816_v6  ;;  %v1851_v6 = vld [vmem:[%s2540_s13] ss:$0 sm:$0xff] }
 0x403   : > { %2003 = vmatprep.mubr.msk.bf16.mxu0 %vm2154_vm1, %v2153_v5  ;;  %2000 = vmatpush3.bf16.msra.mxu0 %v2099_v31  ;;  %v1858_v31 = vld [vmem:[%s2542_s15] ss:$0 sm:$0xff] }
 0x404   : > { %2001 = vmatprep.subr.bf16.mxu0 %v2153_v5 }
 0x407   : > { %2002 = vmatpush3.bf16.msra.mxu0 %v2100_v32 }
 0x408   : > { %2019 = vmatprep.subr.bf16.mxu0 %v2153_v5 }
 0x4ba   : > { %v749_v9 = vpop.f32.mrf.mxu0 }
 0x4bc   : > { %v1977_v10 = vpop.f32.mrf.mxu0 }
 0x4be   : > { %v752_v11 = vpop.f32.mrf.mxu0 }
 0x4c0   : > { %v1978_v12 = vpop.f32.mrf.mxu0 }
 0x4c2   : > { %v859_v13 = vpop.f32.mrf.mxu0 }
 0x4c3   : > { %866 = vrot.lane.b32.xlu1 %v859_v13, %s2160_s28 }
 0x4c4   : > { %v1989_v14 = vpop.f32.mrf.mxu0 }
 0x4c6   : > { %v862_v15 = vpop.f32.mrf.mxu0 }
 0x4c8   : > { %v1990_v16 = vpop.f32.mrf.mxu0 }
 0x4c9   : > { %v2105_v16 = vld [vmem:[%s2531_s4 + $0x18] sm:$0xff]  }
 0x535   : > { %v867_v17 = vpop.permute.xlu1 %866 }
 0x536   : > { %v869_v18 = vsel %vm646_vm3, %v749_v9, %v867_v17  ;;  %v2106_v17 = vld [vmem:[%s2531_s4 + $0x10] sm:$0xff]  }
 0x537   : > { %v870_v19 = vpack.c.bf16 %v869_v18, %v869_v18 }
 0x539   : > { %1996 = vmatmul.mubr.msk.bf16.vlgmr.msra.gmra.mxu1 %vm542_vm0, %v870_v19 }
 0x53a   : > { %2015 = vmatprep.mubr.msk.bf16.mxu1 %vm2154_vm1, %v2153_v5  ;;  %2008 = vmatpush3.bf16.msra.mxu1 %v2101_v49 }
 0x53b   : > { %2009 = vmatprep.subr.bf16.mxu1 %v2153_v5 }
 0x53e   : > { %2010 = vmatpush3.bf16.msra.mxu1 %v2102_v50 }
 0x53f   : > { %2011 = vmatprep.subr.bf16.mxu1 %v2153_v5 }
 0x542   : > { %2012 = vmatpush3.bf16.msra.mxu1 %v2103_v51 }
 0x543   : > { %2013 = vmatprep.subr.bf16.mxu1 %v2153_v5 }
 0x546   : > { %2014 = vmatpush3.bf16.msra.mxu1 %v2104_v52 }
 0x547   : > { %2033 = vmatprep.subr.bf16.mxu1 %v2153_v5 }
 0x5f9   : > { %v931_v22 = vpop.f32.mrf.mxu1 }
 0x5fa   : > { %v932_v23 = vadd.f32 %v1841_v20, %v931_v22 }
 0x5fb   : > { %v1997_v24 = vpop.f32.mrf.mxu1 }
 0x5fc   : > { %v937_v25 = vadd.f32 %v932_v23, %v2288_v21 }
 0x5fd   : > { %v934_v26 = vpop.f32.mrf.mxu1 }
 0x5fe   : > { %v940_v27 = vsel %vm542_vm0, %v937_v25, 0.0  ;;  %v943_v28 = vmul.f32 %v937_v25, %v937_v25 }
 0x5ff   : > { %941 = vadd.xlane.f32.xlu1 %v940_v27  ;;  %v1998_v29 = vpop.f32.mrf.mxu1 }
 0x600   : > { %v944_v30 = vsel %vm542_vm0, %v943_v28, 0.0  ;;  %v1857_v29 = vld [vmem:[%s2541_s14] ss:$0 sm:$0xff] }
 0x601   : > { %945 = vadd.xlane.f32.xlu0 %v944_v30 }
 0x688   : > { %v942_v21 = vpop.xlane.xlu1 %941 }
 0x689   : > { %v947_v33 = vmul.f32 0.03125, %v942_v21 }
 0x68a   : > { %v946_v34 = vpop.xlane.xlu0 %945 }
 0x68b   : > { %v949_v36 = vmul.f32 %v947_v33, %v947_v33  ;;  %v948_v37 = vmul.f32 0.03125, %v946_v34  ;;  %v952_v41 = vsub.f32 %v937_v25, %v947_v33  ;;  %v1864_v34 = vld [vmem:[%s2532_s5 + $0x1] ss:$0 sm:$0xff] }
 0x68d   : > { %v950_v38 = vsub.f32 %v948_v37, %v949_v36 }
 0x68f   : > { %v951_v39 = vmax.f32 %v950_v38, 0.0 }
 0x691   : > { %v953_v40 = vadd.f32 1e-12, %v951_v39 }
 0x693   : > { %2125 = vrsqrt.f32 %v953_v40 }
 0x6a0   : > { %v2126_v42 = vpop.eup %2125 }
 0x6a1   : > { %v955_v44 = vmul.f32 %v2126_v42, %v952_v41 }
 0x6a3   : > { %v962_v46 = vmul.f32 %v1845_v43, %v955_v44 }
 0x6a5   : > { %v969_v47 = vadd.f32 %v1846_v45, %v962_v46 }
 0x6a7   : > { %v970_v48 = vpack.c.bf16 %v969_v47, %v969_v47 }
 0x6a9   : > { %2004 = vmatmul.mubr.msk.bf16.vlgmr.msra.gmra.mxu0 %vm542_vm0, %v970_v48 }
 0x6aa   : > { %2023 = vmatprep.mubr.msk.bf16.mxu0 %vm2154_vm1, %v2153_v5  ;;  %2020 = vmatpush3.bf16.msra.mxu0 %v2105_v16 }
 0x6ab   : > { %2021 = vmatprep.subr.bf16.mxu0 %v2153_v5 }
 0x6ae   : > { %2022 = vmatpush3.bf16.msra.mxu0 %v2106_v17  ;;  %v2107_v17 = vld [vmem:[%s2533_s6 + $0x18] sm:$0xff]  }
 0x6af   : > { %2027 = vmatprep.subr.bf16.mxu0 %v2153_v5 }
 0x769   : > { %v1031_v54 = vpop.f32.mrf.mxu0 }
 0x76a   : > { %v1032_v55 = vadd.f32 %v1847_v53, %v1031_v54 }
 0x76b   : > { %v2005_v56 = vpop.f32.mrf.mxu0 }
 0x76c   : > { %v1037_v57 = vmul.f32 %v1032_v55, %v1032_v55 }
 0x76d   : > { %v1034_v58 = vpop.f32.mrf.mxu0 }
 0x76e   : > { %v1038_v59 = vmul.f32 %v1037_v57, %v1032_v55 }
 0x76f   : > { %v2006_v60 = vpop.f32.mrf.mxu0 }
 0x770   : > { %v1039_v61 = vmul.f32 0.044715, %v1038_v59 }
 0x772   : > { %v1040_v62 = vadd.f32 %v1039_v61, %v1032_v55 }
 0x774   : > { %v1041_v63 = vmul.f32 0.7978846, %v1040_v62 }
 0x776   : > { %2127 = vtanh.f32 %v1041_v63 }
 0x783   : > { %v2128_v0 = vpop.eup %2127 }
 0x784   : > { %v1043_v1 = vadd.f32 1.0, %v2128_v0 }
 0x786   : > { %v1044_v2 = vmul.f32 0.5, %v1043_v1 }
 0x788   : > { %v1045_v3 = vmul.f32 %v1044_v2, %v1032_v55 }
 0x78a   : > { %v1046_v4 = vpack.c.bf16 %v1045_v3, %v1045_v3 }
 0x78c   : > { %2016 = vmatmul.mubr.msk.bf16.vlgmr.msra.gmra.mxu1 %vm1086_vm6, %v1046_v4 }
 0x78d   : > { %2035 = vmatprep.mubr.msk.bf16.mxu1 %vm2154_vm1, %v2153_v5 }
 0x84c   : > { %v1124_v7 = vpop.f32.mrf.mxu1 }
 0x84d   : > { %v1125_v8 = vadd.f32 %v1851_v6, %v1124_v7 }
 0x84e   : > { %v2017_v9 = vpop.f32.mrf.mxu1 }
 0x84f   : > { %v1130_v10 = vadd.f32 %v1125_v8, %v969_v47 }
 0x850   : > { %v1127_v11 = vpop.f32.mrf.mxu1 }
 0x851   : > { %v1133_v12 = vsel %vm542_vm0, %v1130_v10, 0.0  ;;  %v1136_v13 = vmul.f32 %v1130_v10, %v1130_v10 }
 0x852   : > { %1134 = vadd.xlane.f32.xlu1 %v1133_v12  ;;  %v2018_v14 = vpop.f32.mrf.mxu1 }
 0x853   : > { %v1137_v15 = vsel %vm542_vm0, %v1136_v13, 0.0 }
 0x856   : > { %1138 = vadd.xlane.f32.xlu1 %v1137_v15 }
 0x8db   : > { %v1135_v18 = vpop.xlane.xlu1 %1134 }
 0x8dc   : > { %v1140_v19 = vmul.f32 0.03125, %v1135_v18  ;;  %v2108_v18 = vld [vmem:[%s2533_s6 + $0x10] sm:$0xff]  }
 0x8de   : > { %v1142_v22 = vmul.f32 %v1140_v19, %v1140_v19  ;;  %v1145_v27 = vsub.f32 %v1130_v10, %v1140_v19 }
 0x8df   : > { %v1139_v20 = vpop.xlane.xlu1 %1138 }
 0x8e0   : > { %v1141_v23 = vmul.f32 0.03125, %v1139_v20 }
 0x8e2   : > { %v1143_v24 = vsub.f32 %v1141_v23, %v1142_v22 }
 0x8e4   : > { %v1144_v25 = vmax.f32 %v1143_v24, 0.0 }
 0x8e6   : > { %v1146_v26 = vadd.f32 1e-12, %v1144_v25 }
 0x8e8   : > { %2129 = vrsqrt.f32 %v1146_v26 }
 0x8f5   : > { %v2130_v28 = vpop.eup %2129 }
 0x8f6   : > { %v1148_v30 = vmul.f32 %v2130_v28, %v1145_v27 }
 0x8f8   : > { %v1155_v32 = vmul.f32 %v1857_v29, %v1148_v30 }
 0x8fa   : > { %v2415_v21 = vadd.f32 %v1858_v31, %v1155_v32  ;;  %v1877_v31 = vld [vmem:[%s2534_s7 + $0x1] ss:$0 sm:$0xff] }
 0x8fc   : > { %1163 = vst.msk [vmem:[%s2286_s26 + $0x1] sm:$0x1] %vm573_vm2, %v2415_v21  ;;  %v1164_v33 = vpack.c.bf16 %v2415_v21, %v2415_v21 }
 0x8fe   : > { %2024 = vmatmul.mubr.msk.bf16.vlgmr.msra.gmra.mxu0 %vm542_vm0, %v1164_v33 }
 0x8ff   : > { %2029 = vmatprep.mubr.msk.bf16.mxu0 %vm2154_vm1, %v2153_v5 }
 0x9be   : > { %v1227_v36 = vpop.f32.mrf.mxu0 }
 0x9bf   : > { %v1228_v37 = vadd.f32 %v1864_v34, %v1227_v36 }
 0x9c0   : > { %v2025_v38 = vpop.f32.mrf.mxu0 }
 0x9c1   : > { %v1233_v39 = vpack.c.bf16 %v1228_v37, %v1228_v37 }
 0x9c2   : > { %v1230_v40 = vpop.f32.mrf.mxu0 }
 0x9c3   : > { %1345 = vrot.lane.b32.xlu1 %v1233_v39, %s2157_s0  ;;  %1235 = vrot.lane.b32.xlu0 %v1233_v39, %s2156_s30 }
 0x9c4   : > { %v2026_v41 = vpop.f32.mrf.mxu0 }
 0x9c7   : > { %1343 = vrot.lane.b32.xlu1 %v1233_v39, %s2155_s29 }
 0xa35   : > { %v1236_v42 = vpop.permute.xlu0 %1235  ;;  %v1346_v44 = vpop.permute.xlu1 %1345 }
 0xa36   : > { %v1241_v43 = vsel %vm646_vm3, %v1236_v42, 0  ;;  %v1351_v45 = vsel %vm646_vm3, %v1346_v44, 0  ;;  %v2109_v42 = vld [vmem:[%s2537_s10 + $0x18] sm:$0xff]  }
 0xa37   : > { %2028 = vmatpush3.bf16.xpose.msra.mxu0 %v1241_v43  ;;  %v2110_v43 = vld [vmem:[%s2537_s10 + $0x10] sm:$0xff]  }
 0xa38   : > { %2039 = vmatprep.subr.bf16.mxu0 %v2153_v5 }
 0xa39   : > { %v1344_v46 = vpop.permute.xlu1 %1343 }
 0xa3e   : > { %2030 = vmatmul.mubr.msk.bf16.vlgmr.msra.gmra.mxu0 %vm646_vm3, %v1233_v39 }
 0xa3f   : > { %2040 = vmatpush3.bf16.xpose.msra.mxu0 %v1351_v45  ;;  %2041 = vmatprep.mubr.msk.bf16.mxu0 %vm2154_vm1, %v2153_v5 }
 0xa40   : > { %2051 = vmatprep.subr.bf16.mxu0 %v2153_v5 }
 0xa46   : > { %2042 = vmatmul.mubr.msk.bf16.vlgmr.msra.gmra.mxu0 %vm646_vm3, %v1344_v46 }
 0xa47   : > { %2055 = vmatprep.mubr.msk.bf16.mxu0 %vm2154_vm1, %v2153_v5  ;;  %2052 = vmatpush3.bf16.msra.mxu0 %v2107_v17 }
 0xa48   : > { %2053 = vmatprep.subr.bf16.mxu0 %v2153_v5 }
 0xa4b   : > { %2054 = vmatpush3.bf16.msra.mxu0 %v2108_v18 }
 0xa4c   : > { %2067 = vmatprep.subr.bf16.mxu0 %v2153_v5 }
 0xafe   : > { %v1277_v47 = vpop.f32.mrf.mxu0 }
 0xaff   : > { %v1278_v48 = vadd.f32 %v2318_v35, %v1277_v47 }
 0xb00   : > { %v2031_v49 = vpop.f32.mrf.mxu0 }
 0xb01   : > { %v1283_v50 = vsel %vm693_vm4, %v1278_v48, -inf }
 0xb02   : > { %1284 = vmax.xlane.f32.xlu0 %v1283_v50  ;;  %v1280_v51 = vpop.f32.mrf.mxu0 }
 0xb04   : > { %v2032_v52 = vpop.f32.mrf.mxu0 }
 0xb06   : > { %v1387_v53 = vpop.f32.mrf.mxu0 }
 0xb07   : > { %v1388_v54 = vadd.f32 %v2318_v35, %v1387_v53  ;;  %v1883_v53 = vld [vmem:[%s2535_s8 + $0x1] ss:$0 sm:$0xff] }
 0xb08   : > { %v2043_v55 = vpop.f32.mrf.mxu0 }
 0xb09   : > { %v1393_v56 = vsel %vm693_vm4, %v1388_v54, -inf  ;;  %v1884_v55 = vld [vmem:[%s2536_s9 + $0x1] ss:$0 sm:$0xff] }
 0xb0a   : > { %1394 = vmax.xlane.f32.xlu1 %v1393_v56  ;;  %v1390_v57 = vpop.f32.mrf.mxu0 }
 0xb0c   : > { %v2044_v58 = vpop.f32.mrf.mxu0 }
 0xb1b   : > { %1295 = vrot.lane.b32.xlu1 %v1233_v39, %s2159_s20 }
 0xb8b   : > { %v1285_v59 = vpop.xlane.xlu0 %1284 }
 0xb8c   : > { %v1286_v60 = vsub.f32 %v1278_v48, %v1285_v59  ;;  %v2111_v59 = vld [vmem:[%s2539_s12 + $0x38] sm:$0xff]  }
 0xb8e   : > { %v1287_v61 = vmul.f32 1.442695, %v1286_v60  ;;  %v2112_v60 = vld [vmem:[%s2539_s12 + $0x30] sm:$0xff]  }
 0xb90   : > { %2131 = vpow2.f32 %v1287_v61  ;;  %v2113_v61 = vld [vmem:[%s2539_s12 + $0x28] sm:$0xff]  }
 0xb93   : > { %v1395_v62 = vpop.xlane.xlu1 %1394 }
 0xb94   : > { %v1396_v63 = vsub.f32 %v1388_v54, %v1395_v62  ;;  %v2114_v62 = vld [vmem:[%s2539_s12 + $0x20] sm:$0xff]  }
 0xb96   : > { %v1397_v0 = vmul.f32 1.442695, %v1396_v63  ;;  %v1890_v63 = vld [vmem:[%s2538_s11 + $0x1] ss:$0 sm:$0xff] }
 0xb97   : > { %v1296_v1 = vpop.permute.xlu1 %1295 }
 0xb98   : > { %2133 = vpow2.f32 %v1397_v0  ;;  %v1301_v2 = vsel %vm711_vm5, %v1296_v1, 0 }
 0xb99   : > { %2034 = vmatpush3.bf16.msra.mxu1 %v1301_v2 }
 0xb9a   : > { %2045 = vmatprep.subr.bf16.mxu1 %v2153_v5 }
 0xb9d   : > { %v2132_v35 = vpop.eup %2131 }
 0xb9e   : > { %v1289_v3 = vsel %vm693_vm4, %v2132_v35, 0.0 }
 0xb9f   : > { %1290 = vadd.xlane.f32.xlu0 %v1289_v3 }
 0xba5   : > { %v2134_v4 = vpop.eup %2133 }
 0xba6   : > { %v1399_v6 = vsel %vm693_vm4, %v2134_v4, 0.0 }
 0xba7   : > { %1400 = vadd.xlane.f32.xlu0 %v1399_v6 }
 0xbbd   : > { %1405 = vrot.lane.b32.xlu0 %v1233_v39, %s2158_s22 }
 0xc28   : > { %v1291_v7 = vpop.xlane.xlu0 %1290 }
 0xc29   : > { %2135 = vrcp.f32 %v1291_v7 }
 0xc30   : > { %v1401_v8 = vpop.xlane.xlu0 %1400 }
 0xc31   : > { %2137 = vrcp.f32 %v1401_v8 }
 0xc34   : > { %v1406_v11 = vpop.permute.xlu0 %1405 }
 0xc35   : > { %v1411_v13 = vsel %vm711_vm5, %v1406_v11, 0 }
 0xc36   : > { %v2136_v9 = vpop.eup %2135 }
 0xc37   : > { %v1293_v10 = vmul.f32 %v2136_v9, %v2132_v35 }
 0xc39   : > { %v1294_v12 = vpack.c.bf16 %v1293_v10, %v1293_v10 }
 0xc3b   : > { %2036 = vmatmul.mubr.msk.bf16.vlgmr.msra.gmra.mxu1 %vm693_vm4, %v1294_v12 }
 0xc3c   : > { %2046 = vmatpush3.bf16.msra.mxu1 %v1411_v13  ;;  %2047 = vmatprep.mubr.msk.bf16.mxu1 %vm2154_vm1, %v2153_v5 }
 0xc3d   : > { %2059 = vmatprep.subr.bf16.mxu1 %v2153_v5 }
 0xc3e   : > { %v2138_v14 = vpop.eup %2137 }
 0xc3f   : > { %v1403_v15 = vmul.f32 %v2138_v14, %v2134_v4  ;;  %v1903_v14 = vld [vmem:[%s2540_s13 + $0x1] ss:$0 sm:$0xff] }
 0xc41   : > { %v1404_v16 = vpack.c.bf16 %v1403_v15, %v1403_v15 }
 0xc43   : > { %2048 = vmatmul.mubr.msk.bf16.vlgmr.msra.gmra.mxu1 %vm693_vm4, %v1404_v16 }
 0xc44   : > { %2063 = vmatprep.mubr.msk.bf16.mxu1 %vm2154_vm1, %v2153_v5  ;;  %2060 = vmatpush3.bf16.msra.mxu1 %v2109_v42 }
 0xc45   : > { %2061 = vmatprep.subr.bf16.mxu1 %v2153_v5 }
 0xc48   : > { %2062 = vmatpush3.bf16.msra.mxu1 %v2110_v43 }
 0xcfb   : > { %v1337_v19 = vpop.f32.mrf.mxu1 }
 0xcfd   : > { %v2037_v20 = vpop.f32.mrf.mxu1 }
 0xcff   : > { %v1340_v22 = vpop.f32.mrf.mxu1 }
 0xd01   : > { %v2038_v23 = vpop.f32.mrf.mxu1 }
 0xd03   : > { %v1447_v24 = vpop.f32.mrf.mxu1 }
 0xd04   : > { %1454 = vrot.lane.b32.xlu1 %v1447_v24, %s2160_s28 }
 0xd05   : > { %v2049_v25 = vpop.f32.mrf.mxu1 }
 0xd07   : > { %v1450_v26 = vpop.f32.mrf.mxu1 }
 0xd09   : > { %v2050_v27 = vpop.f32.mrf.mxu1 }
 0xd76   : > { %v1455_v28 = vpop.permute.xlu1 %1454 }
 0xd77   : > { %v1457_v29 = vsel %vm646_vm3, %v1337_v19, %v1455_v28 }
 0xd78   : > { %v1458_v30 = vpack.c.bf16 %v1457_v29, %v1457_v29 }
 0xd7a   : > { %2056 = vmatmul.mubr.msk.bf16.vlgmr.msra.gmra.mxu0 %vm542_vm0, %v1458_v30 }
 0xd7b   : > { %2075 = vmatprep.mubr.msk.bf16.mxu0 %vm2154_vm1, %v2153_v5  ;;  %2068 = vmatpush3.bf16.msra.mxu0 %v2111_v59 }
 0xd7c   : > { %2069 = vmatprep.subr.bf16.mxu0 %v2153_v5 }
 0xd7f   : > { %2070 = vmatpush3.bf16.msra.mxu0 %v2112_v60 }
 0xd80   : > { %2071 = vmatprep.subr.bf16.mxu0 %v2153_v5 }
 0xd83   : > { %2072 = vmatpush3.bf16.msra.mxu0 %v2113_v61 }
 0xd84   : > { %2073 = vmatprep.subr.bf16.mxu0 %v2153_v5 }
 0xd87   : > { %2074 = vmatpush3.bf16.msra.mxu0 %v2114_v62 }
 0xe3a   : > { %v1521_v32 = vpop.f32.mrf.mxu0 }
 0xe3b   : > { %v1522_v33 = vadd.f32 %v1877_v31, %v1521_v32 }
 0xe3c   : > { %v2057_v34 = vpop.f32.mrf.mxu0 }
 0xe3d   : > { %v1527_v36 = vadd.f32 %v1522_v33, %v2415_v21 }
 0xe3e   : > { %v1524_v37 = vpop.f32.mrf.mxu0 }
 0xe3f   : > { %v1532_v38 = vsel %vm542_vm0, %v1527_v36, 0.0  ;;  %v1535_v39 = vmul.f32 %v1527_v36, %v1527_v36 }
 0xe40   : > { %1533 = vadd.xlane.f32.xlu1 %v1532_v38  ;;  %v2058_v40 = vpop.f32.mrf.mxu0  ;;  %v1912_v38 = vld [vmem:[%s2542_s15 + $0x1] ss:$0 sm:$0xff] }
 0xe41   : > { %v1536_v41 = vsel %vm542_vm0, %v1535_v39, 0.0 }
 0xe42   : > { %1537 = vadd.xlane.f32.xlu0 %v1536_v41 }
 0xec9   : > { %v1534_v21 = vpop.xlane.xlu1 %1533 }
 0xeca   : > { %v1539_v44 = vmul.f32 0.03125, %v1534_v21 }
 0xecb   : > { %v1538_v45 = vpop.xlane.xlu0 %1537 }
 0xecc   : > { %v1541_v46 = vmul.f32 %v1539_v44, %v1539_v44  ;;  %v1540_v47 = vmul.f32 0.03125, %v1538_v45  ;;  %v1544_v51 = vsub.f32 %v1527_v36, %v1539_v44  ;;  %v1911_v36 = vld [vmem:[%s2541_s14 + $0x1] ss:$0 sm:$0xff] }
 0xece   : > { %v1542_v48 = vsub.f32 %v1540_v47, %v1541_v46 }
 0xed0   : > { %v1543_v49 = vmax.f32 %v1542_v48, 0.0 }
 0xed2   : > { %v1545_v50 = vadd.f32 1e-12, %v1543_v49 }
 0xed4   : > { %2139 = vrsqrt.f32 %v1545_v50 }
 0xee1   : > { %v2140_v52 = vpop.eup %2139 }
 0xee2   : > { %v1547_v54 = vmul.f32 %v2140_v52, %v1544_v51 }
 0xee4   : > { %v1554_v56 = vmul.f32 %v1883_v53, %v1547_v54 }
 0xee6   : > { %v1561_v57 = vadd.f32 %v1884_v55, %v1554_v56 }
 0xee8   : > { %v1562_v58 = vpack.c.bf16 %v1561_v57, %v1561_v57 }
 0xeea   : > { %2064 = vmatmul.mubr.msk.bf16.vlgmr.msra.gmra.mxu1 %vm542_vm0, %v1562_v58 }
 0xfaa   : > { %v1625_v0 = vpop.f32.mrf.mxu1 }
 0xfab   : > { %v1626_v1 = vadd.f32 %v1890_v63, %v1625_v0 }
 0xfac   : > { %v2065_v2 = vpop.f32.mrf.mxu1 }
 0xfad   : > { %v1631_v35 = vmul.f32 %v1626_v1, %v1626_v1 }
 0xfae   : > { %v1628_v3 = vpop.f32.mrf.mxu1 }
 0xfaf   : > { %v1632_v4 = vmul.f32 %v1631_v35, %v1626_v1 }
 0xfb0   : > { %v2066_v6 = vpop.f32.mrf.mxu1 }
 0xfb1   : > { %v1633_v7 = vmul.f32 0.044715, %v1632_v4 }
 0xfb3   : > { %v1634_v8 = vadd.f32 %v1633_v7, %v1626_v1 }
 0xfb5   : > { %v1635_v9 = vmul.f32 0.7978846, %v1634_v8 }
 0xfb7   : > { %2141 = vtanh.f32 %v1635_v9 }
 0xfc4   : > { %v2142_v5 = vpop.eup %2141 }
 0xfc5   : > { %v1637_v10 = vadd.f32 1.0, %v2142_v5 }
 0xfc7   : > { %v1638_v11 = vmul.f32 0.5, %v1637_v10 }
 0xfc9   : > { %v1639_v12 = vmul.f32 %v1638_v11, %v1626_v1 }
 0xfcb   : > { %v1640_v13 = vpack.c.bf16 %v1639_v12, %v1639_v12 }
 0xfcd   : > { %2076 = vmatmul.mubr.msk.bf16.vlgmr.msra.gmra.mxu0 %vm1086_vm6, %v1640_v13 }
0x108d   : > { %v1719_v15 = vpop.f32.mrf.mxu0 }
0x108e   : > { %v1720_v16 = vadd.f32 %v1903_v14, %v1719_v15 }
0x108f   : > { %v2077_v17 = vpop.f32.mrf.mxu0 }
0x1090   : > { %v1725_v18 = vadd.f32 %v1720_v16, %v1561_v57 }
0x1091   : > { %v1722_v19 = vpop.f32.mrf.mxu0 }
0x1092   : > { %v1730_v20 = vsel %vm542_vm0, %v1725_v18, 0.0  ;;  %v1733_v22 = vmul.f32 %v1725_v18, %v1725_v18 }
0x1093   : > { %1731 = vadd.xlane.f32.xlu0 %v1730_v20  ;;  %v2078_v23 = vpop.f32.mrf.mxu0 }
0x1094   : > { %v1734_v24 = vsel %vm542_vm0, %v1733_v22, 0.0 }
0x1095   : > { %1735 = vadd.xlane.f32.xlu1 %v1734_v24 }
0x111c   : > { %v1732_v25 = vpop.xlane.xlu0 %1731 }
0x111d   : > { %v1737_v26 = vmul.f32 0.03125, %v1732_v25 }
0x111e   : > { %v1736_v27 = vpop.xlane.xlu1 %1735 }
0x111f   : > { %v1739_v28 = vmul.f32 %v1737_v26, %v1737_v26  ;;  %v1738_v29 = vmul.f32 0.03125, %v1736_v27  ;;  %v1742_v33 = vsub.f32 %v1725_v18, %v1737_v26 }
0x1121   : > { %v1740_v30 = vsub.f32 %v1738_v29, %v1739_v28 }
0x1123   : > { %v1741_v31 = vmax.f32 %v1740_v30, 0.0 }
0x1125   : > { %v1743_v32 = vadd.f32 1e-12, %v1741_v31 }
0x1127   : > { %2143 = vrsqrt.f32 %v1743_v32 }
0x1134   : > { %v2144_v34 = vpop.eup %2143 }
0x1135   : > { %v1745_v37 = vmul.f32 %v2144_v34, %v1742_v33 }
0x1137   : > { %v1752_v39 = vmul.f32 %v1911_v36, %v1745_v37 }
0x1139   : > { %v1759_v40 = vadd.f32 %v1912_v38, %v1752_v39 }
0x113b   : > { %1760 = vst.msk [vmem:[%s2286_s26 + $0x2] sm:$0x1] %vm573_vm2, %v1759_v40 }
0x113c PF: > { %s26_s21 = sadd.s32 1, %s2151_s21  }
0x113d   : > { %p23_p4 = scmp.ge.s32.totalorder %s26_s21, 4  }
0x113f   :  { %25 = sbr.rel (!%p23_p4) target bundleno = 2 (0x2), region = 129 }

</bundles_post_ra>
